<compile_context>
chip_gen: v5e
topology: v5e:2x2
jax: 0.10.0
libtpu: 0.0.40
codegen_flags: <defaults>
</compile_context>

<pallas_src>
import jax
import jax.numpy as jnp
from jax.experimental import pallas as pl
from jax.experimental.pallas import tpu as pltpu

LANE = 128          # lane width: pad channel dims to this
DEFAULT_TILE = 256  # A_hat tile edge (bump to 512 for very large graphs)


def _round_up(x, m):
    return ((x + m - 1) // m) * m


# --------------------------------------------------------------------------- #
# Pallas kernel: one GCN aggregation  out = relu(A_hat @ P + b)
# Grid = (row_tiles [parallel], k_tiles [arbitrary, reduction last]).
# --------------------------------------------------------------------------- #
def gcn_layer_kernel(a_ref, p_ref, b_ref, o_ref, acc_ref):
    k = pl.program_id(1)

    @pl.when(k == 0)
    def _():
        acc_ref[...] = jnp.zeros_like(acc_ref)

    # bf16 x bf16 on the MXU, f32 accumulation.
    acc_ref[...] += jnp.dot(a_ref[...], p_ref[...],
                            preferred_element_type=jnp.float32)

    @pl.when(k == pl.num_programs(1) - 1)
    def _():
        # Bias + ReLU on the f32 accumulator (v5e VPU has no bf16); downcast last.
        o_ref[...] = jnp.maximum(acc_ref[...] + b_ref[...], 0.0).astype(o_ref.dtype)


def gcn_aggregate(a_hat_bf16, p_bf16, bias_f32, *, out_dtype, tile=DEFAULT_TILE):
    """relu(A_hat @ P + b) with A_hat streamed as (tile, tile) bf16 blocks."""
    n_pad = a_hat_bf16.shape[0]
    c_pad = p_bf16.shape[1]
    tm = tk = min(tile, n_pad)
    grid = (n_pad // tm, n_pad // tk)

    return pl.pallas_call(
        gcn_layer_kernel,
        out_shape=jax.ShapeDtypeStruct((n_pad, c_pad), out_dtype),
        grid_spec=pltpu.PrefetchScalarGridSpec(
            num_scalar_prefetch=0,
            grid=grid,
            in_specs=[
                pl.BlockSpec((tm, tk), lambda i, k: (i, k)),     # A_hat tile (bf16)
                pl.BlockSpec((tk, c_pad), lambda i, k: (k, 0)),  # projected feats (bf16)
                pl.BlockSpec((1, c_pad), lambda i, k: (0, 0)),   # bias (resident, f32)
            ],
            out_specs=pl.BlockSpec((tm, c_pad), lambda i, k: (i, 0)),
            scratch_shapes=[pltpu.VMEM((tm, c_pad), jnp.float32)],  # f32 accumulator
        ),
        compiler_params=pltpu.CompilerParams(
            dimension_semantics=("parallel", "arbitrary"),
        ),
    )(a_hat_bf16, p_bf16, bias_f32)


# --------------------------------------------------------------------------- #
# GCN-normalized dense adjacency: A_hat[dst, src] = d^-1/2[src] * w * d^-1/2[dst]
# Built without a 2-D scatter (segment_sum + one-hot matmul -> MXU friendly).
# --------------------------------------------------------------------------- #
def build_normalized_adjacency(edge_index, edge_weight, num_nodes):
    src, dst = edge_index[0], edge_index[1]
    loop = jnp.arange(num_nodes, dtype=src.dtype)
    src = jnp.concatenate([src, loop])
    dst = jnp.concatenate([dst, loop])
    w = jnp.concatenate([edge_weight.astype(jnp.float32),
                         jnp.ones((num_nodes,), jnp.float32)])

    deg = jax.ops.segment_sum(w, dst, num_segments=num_nodes)
    dinv = jnp.where(deg > 0, jax.lax.rsqrt(deg), 0.0)
    norm = dinv[src] * w * dinv[dst]

    node_ids = jnp.arange(num_nodes)
    onehot_dst = (dst[:, None] == node_ids[None, :]).astype(jnp.float32)  # [E, N]
    onehot_src = (src[:, None] == node_ids[None, :]).astype(jnp.float32)  # [E, N]
    # A[d, s] = sum_e norm[e] * [dst[e]==d] * [src[e]==s]   (duplicate edges summed)
    a = jnp.dot((onehot_dst * norm[:, None]).T, onehot_src,
                preferred_element_type=jnp.float32)
    return a


# --------------------------------------------------------------------------- #
# Forward pass of AttributeDecoder.
# --------------------------------------------------------------------------- #
def attribute_decoder_forward(x, edge_index, edge_weight, params, *, tile=DEFAULT_TILE):
    n, nhid = x.shape
    w1, b1, w2, b2 = params
    nfeat = w2.shape[1]

    n_pad = _round_up(n, min(tile, _round_up(n, LANE)))
    n_pad = _round_up(n_pad, LANE)
    c1_pad = _round_up(nhid, LANE)
    c2_pad = _round_up(nfeat, LANE)

    # A_hat in bf16 (dominant HBM traffic). For a static graph, precompute and cache
    # this outside the jitted forward instead of rebuilding every call.
    a_hat = build_normalized_adjacency(edge_index, edge_weight, n)
    a_pad = jnp.pad(a_hat.astype(jnp.bfloat16), ((0, n_pad - n), (0, n_pad - n)))

    x_pad = jnp.pad(x.astype(jnp.float32), ((0, n_pad - n), (0, 0)))
    w1_pad = jnp.pad(w1, ((0, 0), (0, c1_pad - nhid)))
    b1_pad = jnp.pad(b1, (0, c1_pad - nhid)).reshape(1, c1_pad)
    w2_pad = jnp.pad(w2, ((0, c1_pad - nhid), (0, c2_pad - nfeat)))
    b2_pad = jnp.pad(b2, (0, c2_pad - nfeat)).reshape(1, c2_pad)

    # Layer 1: tiny projection in plain JAX (f32), heavy A_hat aggregation in Pallas.
    p1 = jnp.dot(x_pad, w1_pad, preferred_element_type=jnp.float32).astype(jnp.bfloat16)
    h = gcn_aggregate(a_pad, p1, b1_pad, out_dtype=jnp.bfloat16, tile=tile)

    # Dropout: module used in eval/inference mode -> identity.
    # TODO(synk): training-mode dropout would use pltpu.prng_seed / stateful_bernoulli.

    # Layer 2.
    p2 = jnp.dot(h.astype(jnp.float32), w2_pad,
                 preferred_element_type=jnp.float32).astype(jnp.bfloat16)
    out = gcn_aggregate(a_pad, p2, b2_pad, out_dtype=jnp.float32, tile=tile)

    return out[:n, :nfeat]


def glorot(key, shape):
    fan_in, fan_out = shape
    limit = jnp.sqrt(6.0 / (fan_in + fan_out))
    return jax.random.uniform(key, shape, jnp.float32, -limit, limit)


if __name__ == "__main__":
    key = jax.random.PRNGKey(0)
    N = 512       # number of graph nodes (exercises the (2, 2) tile grid)
    NHID = 32     # hidden dim (decoder input)
    NFEAT = 16    # reconstructed attribute dim
    E = 1024      # number of directed edges

    k_x, k_src, k_dst, k_w, k_w1, k_w2 = jax.random.split(key, 6)

    x = jax.random.normal(k_x, (N, NHID), jnp.float32)
    src = jax.random.randint(k_src, (E,), 0, N, jnp.int32)
    dst = jax.random.randint(k_dst, (E,), 0, N, jnp.int32)
    edge_index = jnp.stack([src, dst], axis=0)
    edge_weight = jax.random.uniform(k_w, (E,), jnp.float32, 0.5, 1.5)

    # Deterministic parameters (Glorot weights, zero bias), matching GCNConv shapes.
    w1 = glorot(k_w1, (NHID, NHID))
    b1 = jnp.zeros((NHID,), jnp.float32)
    w2 = glorot(k_w2, (NHID, NFEAT))
    b2 = jnp.zeros((NFEAT,), jnp.float32)
    params = (w1, b1, w2, b2)

    fwd = jax.jit(attribute_decoder_forward)
    out = jax.block_until_ready(fwd(x, edge_index, edge_weight, params))

    # Reference 1: pure-f32 math of the original module.
    a_hat = build_normalized_adjacency(edge_index, edge_weight, N)
    ref_h = jnp.maximum(a_hat @ (x @ w1) + b1, 0.0)
    ref = jnp.maximum(a_hat @ (ref_h @ w2) + b2, 0.0)
    assert out.shape == (N, NFEAT)
    assert jnp.allclose(out, ref, atol=5e-2, rtol=5e-2)

    # Reference 2: mirrors the kernel's bf16 quantization of A_hat / projections.
    a_q = a_hat.astype(jnp.bfloat16).astype(jnp.float32)
    p1_q = (x @ w1).astype(jnp.bfloat16).astype(jnp.float32)
    h_q = jnp.maximum(a_q @ p1_q + b1, 0.0).astype(jnp.bfloat16).astype(jnp.float32)
    p2_q = (h_q @ w2).astype(jnp.bfloat16).astype(jnp.float32)
    ref_q = jnp.maximum(a_q @ p2_q + b2, 0.0)
    assert jnp.allclose(out, ref_q, atol=1e-2, rtol=1e-2)

    print("KERNEL_OK")
</pallas_src>

<mosaic_0001>
module attributes {stable_mosaic.version = 11 : i64} {
  func.func @gcn_layer_kernel(%arg0: i32, %arg1: i32, %arg2: memref<256x256xbf16, #tpu.memory_space<vmem>>, %arg3: memref<256x128xbf16, #tpu.memory_space<vmem>>, %arg4: memref<1x128xf32, #tpu.memory_space<vmem>>, %arg5: memref<256x128xbf16, #tpu.memory_space<vmem>>, %arg6: memref<256x128xf32, #tpu.memory_space<vmem>>) attributes {dimension_semantics = [#tpu.dimension_semantics<parallel>, #tpu.dimension_semantics<arbitrary>], iteration_bounds = array<i64: 2, 2>, scalar_prefetch = 0 : i64, scratch_operands = 1 : i64, tpu.core_type = #tpu.core_type<tc>, window_params = [{transform_indices = @transform_0, window_bounds = array<i64: 256, 256>}, {transform_indices = @transform_1, window_bounds = array<i64: 256, 128>}, {pipeline_mode = #tpu.pipeline_mode<synchronous>, transform_indices = @transform_2, window_bounds = array<i64: 1, 128>}, {transform_indices = @transform_3, window_bounds = array<i64: 256, 128>}]} {
    %c0_i32 = arith.constant 0 : i32
    %0 = arith.cmpi eq, %arg1, %c0_i32 : i32
    %1 = arith.extui %0 : i1 to i32
    %c0_i32_0 = arith.constant 0 : i32
    %2 = arith.cmpi ne, %1, %c0_i32_0 : i32
    scf.if %2 {
      %cst_9 = arith.constant 0.000000e+00 : f32
      %12 = vector.broadcast %cst_9 : f32 to vector<256x128xf32>
      %c0_10 = arith.constant 0 : index
      %c0_11 = arith.constant 0 : index
      %13 = vector.load %arg6[%c0_10, %c0_11] : memref<256x128xf32, #tpu.memory_space<vmem>>, vector<256x128xf32>
      tpu.vector_store %arg6[%c0_10, %c0_11], %12 {strides = array<i32>} : memref<256x128xf32, #tpu.memory_space<vmem>>, vector<256x128xf32>,
    } else {
    }
    %c0 = arith.constant 0 : index
    %c0_1 = arith.constant 0 : index
    %3 = vector.load %arg6[%c0, %c0_1] : memref<256x128xf32, #tpu.memory_space<vmem>>, vector<256x128xf32>
    %c0_2 = arith.constant 0 : index
    %c0_3 = arith.constant 0 : index
    %4 = vector.load %arg2[%c0_2, %c0_3] : memref<256x256xbf16, #tpu.memory_space<vmem>>, vector<256x256xbf16>
    %c0_4 = arith.constant 0 : index
    %c0_5 = arith.constant 0 : index
    %5 = vector.load %arg3[%c0_4, %c0_5] : memref<256x128xbf16, #tpu.memory_space<vmem>>, vector<256x128xbf16>
    %cst = arith.constant dense<0.000000e+00> : vector<256x128xf32>
    %6 = tpu.matmul %4, %5, %cst {dimension_numbers = #tpu.dot_dimension_numbers<[1], [0], [0], [1], [0, 0, 1, 1], [], []>} : vector<256x256xbf16>, vector<256x128xbf16>, vector<256x128xf32> -> vector<256x128xf32>
    %7 = arith.addf %3, %6 : vector<256x128xf32>
    %c0_6 = arith.constant 0 : index
    %c0_7 = arith.constant 0 : index
    %8 = vector.load %arg6[%c0_6, %c0_7] : memref<256x128xf32, #tpu.memory_space<vmem>>, vector<256x128xf32>
    tpu.vector_store %arg6[%c0_6, %c0_7], %7 {strides = array<i32>} : memref<256x128xf32, #tpu.memory_space<vmem>>, vector<256x128xf32>,
    %c1_i32 = arith.constant 1 : i32
    %9 = arith.cmpi eq, %arg1, %c1_i32 : i32
    %10 = arith.extui %9 : i1 to i32
    %c0_i32_8 = arith.constant 0 : i32
    %11 = arith.cmpi ne, %10, %c0_i32_8 : i32
    scf.if %11 {
      %c0_9 = arith.constant 0 : index
      %c0_10 = arith.constant 0 : index
      %12 = vector.load %arg6[%c0_9, %c0_10] : memref<256x128xf32, #tpu.memory_space<vmem>>, vector<256x128xf32>
      %c0_11 = arith.constant 0 : index
      %c0_12 = arith.constant 0 : index
      %13 = vector.load %arg4[%c0_11, %c0_12] : memref<1x128xf32, #tpu.memory_space<vmem>>, vector<1x128xf32>
      %14 = vector.broadcast %13 : vector<1x128xf32> to vector<256x128xf32>
      %15 = arith.addf %12, %14 : vector<256x128xf32>
      %cst_13 = arith.constant 0.000000e+00 : f32
      %16 = vector.broadcast %cst_13 : f32 to vector<256x128xf32>
      %17 = arith.maximumf %15, %16 : vector<256x128xf32>
      %18 = arith.truncf %17 : vector<256x128xf32> to vector<256x128xbf16>
      %c0_14 = arith.constant 0 : index
      %c0_15 = arith.constant 0 : index
      %19 = vector.load %arg5[%c0_14, %c0_15] : memref<256x128xbf16, #tpu.memory_space<vmem>>, vector<256x128xbf16>
      tpu.vector_store %arg5[%c0_14, %c0_15], %18 {strides = array<i32>} : memref<256x128xbf16, #tpu.memory_space<vmem>>, vector<256x128xbf16>,
    } else {
    }
    return
  }
  func.func @transform_0(%arg0: i32, %arg1: i32) -> (i32, i32) {
    %c0_i32 = arith.constant 0 : i32
    return %arg0, %arg1 : i32, i32
  }
  func.func @transform_1(%arg0: i32, %arg1: i32) -> (i32, i32) {
    %c0_i32 = arith.constant 0 : i32
    %c0_i32_0 = arith.constant 0 : i32
    return %arg1, %c0_i32 : i32, i32
  }
  func.func @transform_2(%arg0: i32, %arg1: i32) -> (i32, i32) {
    %c0_i32 = arith.constant 0 : i32
    %c0_i32_0 = arith.constant 0 : i32
    %c0_i32_1 = arith.constant 0 : i32
    return %c0_i32, %c0_i32_0 : i32, i32
  }
  func.func @transform_3(%arg0: i32, %arg1: i32) -> (i32, i32) {
    %c0_i32 = arith.constant 0 : i32
    %c0_i32_0 = arith.constant 0 : i32
    return %arg0, %c0_i32 : i32, i32
  }
}

module attributes {stable_mosaic.version = 11 : i64} {
  func.func @gcn_layer_kernel(%arg0: i32, %arg1: i32, %arg2: memref<256x256xbf16, #tpu.memory_space<vmem>>, %arg3: memref<256x128xbf16, #tpu.memory_space<vmem>>, %arg4: memref<1x128xf32, #tpu.memory_space<vmem>>, %arg5: memref<256x128xf32, #tpu.memory_space<vmem>>, %arg6: memref<256x128xf32, #tpu.memory_space<vmem>>) attributes {dimension_semantics = [#tpu.dimension_semantics<parallel>, #tpu.dimension_semantics<arbitrary>], iteration_bounds = array<i64: 2, 2>, scalar_prefetch = 0 : i64, scratch_operands = 1 : i64, tpu.core_type = #tpu.core_type<tc>, window_params = [{transform_indices = @transform_0, window_bounds = array<i64: 256, 256>}, {transform_indices = @transform_1, window_bounds = array<i64: 256, 128>}, {pipeline_mode = #tpu.pipeline_mode<synchronous>, transform_indices = @transform_2, window_bounds = array<i64: 1, 128>}, {transform_indices = @transform_3, window_bounds = array<i64: 256, 128>}]} {
    %c0_i32 = arith.constant 0 : i32
    %0 = arith.cmpi eq, %arg1, %c0_i32 : i32
    %1 = arith.extui %0 : i1 to i32
    %c0_i32_0 = arith.constant 0 : i32
    %2 = arith.cmpi ne, %1, %c0_i32_0 : i32
    scf.if %2 {
      %cst_9 = arith.constant 0.000000e+00 : f32
      %12 = vector.broadcast %cst_9 : f32 to vector<256x128xf32>
      %c0_10 = arith.constant 0 : index
      %c0_11 = arith.constant 0 : index
      %13 = vector.load %arg6[%c0_10, %c0_11] : memref<256x128xf32, #tpu.memory_space<vmem>>, vector<256x128xf32>
      tpu.vector_store %arg6[%c0_10, %c0_11], %12 {strides = array<i32>} : memref<256x128xf32, #tpu.memory_space<vmem>>, vector<256x128xf32>,
    } else {
    }
    %c0 = arith.constant 0 : index
    %c0_1 = arith.constant 0 : index
    %3 = vector.load %arg6[%c0, %c0_1] : memref<256x128xf32, #tpu.memory_space<vmem>>, vector<256x128xf32>
    %c0_2 = arith.constant 0 : index
    %c0_3 = arith.constant 0 : index
    %4 = vector.load %arg2[%c0_2, %c0_3] : memref<256x256xbf16, #tpu.memory_space<vmem>>, vector<256x256xbf16>
    %c0_4 = arith.constant 0 : index
    %c0_5 = arith.constant 0 : index
    %5 = vector.load %arg3[%c0_4, %c0_5] : memref<256x128xbf16, #tpu.memory_space<vmem>>, vector<256x128xbf16>
    %cst = arith.constant dense<0.000000e+00> : vector<256x128xf32>
    %6 = tpu.matmul %4, %5, %cst {dimension_numbers = #tpu.dot_dimension_numbers<[1], [0], [0], [1], [0, 0, 1, 1], [], []>} : vector<256x256xbf16>, vector<256x128xbf16>, vector<256x128xf32> -> vector<256x128xf32>
    %7 = arith.addf %3, %6 : vector<256x128xf32>
    %c0_6 = arith.constant 0 : index
    %c0_7 = arith.constant 0 : index
    %8 = vector.load %arg6[%c0_6, %c0_7] : memref<256x128xf32, #tpu.memory_space<vmem>>, vector<256x128xf32>
    tpu.vector_store %arg6[%c0_6, %c0_7], %7 {strides = array<i32>} : memref<256x128xf32, #tpu.memory_space<vmem>>, vector<256x128xf32>,
    %c1_i32 = arith.constant 1 : i32
    %9 = arith.cmpi eq, %arg1, %c1_i32 : i32
    %10 = arith.extui %9 : i1 to i32
    %c0_i32_8 = arith.constant 0 : i32
    %11 = arith.cmpi ne, %10, %c0_i32_8 : i32
    scf.if %11 {
      %c0_9 = arith.constant 0 : index
      %c0_10 = arith.constant 0 : index
      %12 = vector.load %arg6[%c0_9, %c0_10] : memref<256x128xf32, #tpu.memory_space<vmem>>, vector<256x128xf32>
      %c0_11 = arith.constant 0 : index
      %c0_12 = arith.constant 0 : index
      %13 = vector.load %arg4[%c0_11, %c0_12] : memref<1x128xf32, #tpu.memory_space<vmem>>, vector<1x128xf32>
      %14 = vector.broadcast %13 : vector<1x128xf32> to vector<256x128xf32>
      %15 = arith.addf %12, %14 : vector<256x128xf32>
      %cst_13 = arith.constant 0.000000e+00 : f32
      %16 = vector.broadcast %cst_13 : f32 to vector<256x128xf32>
      %17 = arith.maximumf %15, %16 : vector<256x128xf32>
      %c0_14 = arith.constant 0 : index
      %c0_15 = arith.constant 0 : index
      %18 = vector.load %arg5[%c0_14, %c0_15] : memref<256x128xf32, #tpu.memory_space<vmem>>, vector<256x128xf32>
      tpu.vector_store %arg5[%c0_14, %c0_15], %17 {strides = array<i32>} : memref<256x128xf32, #tpu.memory_space<vmem>>, vector<256x128xf32>,
    } else {
    }
    return
  }
  func.func @transform_0(%arg0: i32, %arg1: i32) -> (i32, i32) {
    %c0_i32 = arith.constant 0 : i32
    return %arg0, %arg1 : i32, i32
  }
  func.func @transform_1(%arg0: i32, %arg1: i32) -> (i32, i32) {
    %c0_i32 = arith.constant 0 : i32
    %c0_i32_0 = arith.constant 0 : i32
    return %arg1, %c0_i32 : i32, i32
  }
  func.func @transform_2(%arg0: i32, %arg1: i32) -> (i32, i32) {
    %c0_i32 = arith.constant 0 : i32
    %c0_i32_0 = arith.constant 0 : i32
    %c0_i32_1 = arith.constant 0 : i32
    return %c0_i32, %c0_i32_0 : i32, i32
  }
  func.func @transform_3(%arg0: i32, %arg1: i32) -> (i32, i32) {
    %c0_i32 = arith.constant 0 : i32
    %c0_i32_0 = arith.constant 0 : i32
    return %arg0, %c0_i32 : i32, i32
  }
}

</mosaic_0001>

<bundles_post_ra>
// kernel: attribute_decoder_forward.2
= control target key start
LH: loop header
LB: loop body
LE: loop exit
PB: predicated region body
PF: predicated region fallthrough
CT: control target
= control target key end

     0   :  { %s1766_s12 = smov 0   ;;  %s1768_s13 = smov 0   ;;  %s2067_s0 = inlined_call_operand.vmem [shape: bf16[512,512], index: 0, kind: input, shape index: {}]   ;;  %s2068_s1 = inlined_call_operand.vmem [shape: bf16[512,128], index: 1, kind: input, shape index: {}]   ;;  %s2069_s2 = inlined_call_operand.vmem [shape: f32[1,128], index: 2, kind: input, shape index: {}]   ;;  %s2070_s3 = inlined_call_operand.vmem [shape: bf16[512,128], index: 3, kind: output, shape index: {}]  }
   0x1   :  { %s1770_s14 = smov 0   ;;  %s1772_s15 = smov 0  }
   0x2   :  { %s1774_s16 = smov 0   ;;  %s1776_s17 = smov 0  }
   0x3   :  { %s1778_s18 = smov 0  }
   0x4 LB: > { %s22_s19 = sadd.s32 1, %s1735_s16  ;;  %s25_s20 = sadd.s32 1, %s1739_s17  ;;  %s1743_s18 = sphi %s1778_s18, %s13_s18   ;;  %s1739_s17 = sphi %s1776_s17, %s2076_s17   ;;  %s1735_s16 = sphi %s1774_s16, %s2075_s16   ;;  %s1731_s15 = sphi %s1772_s15, %s2074_s15   ;;  %s1727_s14 = sphi %s1770_s14, %s2073_s14   ;;  %s1723_s13 = sphi %s1768_s13, %s2072_s13   ;;  %s1719_s12 = sphi %s1766_s12, %s2071_s12  }
   0x5   : > { %p23_p0 = scmp.ge.s32.totalorder %s22_s19, 2  ;;  %p41_p1 = scmp.ne.s32.totalorder %s1723_s13, %s1719_s12 }
   0x6   : > { %p42_p2 = scmp.eq.s32.totalorder %s1743_s18, 0  ;;  %s34_s24 = sadd.s32 1, %s1723_s13 }
   0x7   : > { %s2078_s19 = smov (%p23_p0, %s22_s19), 0  ;;  %s2080_s20 = smov (!%p23_p0, %s25_s20), %s1739_s17 }
   0x8   : > { %p43_p3 = por %p42_p2, %p41_p1  ;;  %p27_p4 = scmp.ge.s32.totalorder %s2080_s20, 2 }
   0x9   : > { %s30_s21 = ssub.s32 %s1735_s16, %s2078_s19  ;;  %p1263_p6 = scmp.ge.s32.totalorder %s1743_s18, 4 }
   0xa   : > { %s2082_s20 = smov (%p27_p4, %s2080_s20), 0 }
   0xb   : > { %s29_s22 = ssub.s32 %s1739_s17, %s2082_s20  ;;  %143 = sbr.rel (%p1263_p6) target bundleno = 55 (0x37), region = 20 }
   0xc   : > { %s31_s23 = sor.u32 %s30_s21, %s29_s22 }
   0xd   : > { %p32_p5 = scmp.eq.s32.totalorder %s31_s23, 0 }
   0xf   : > { %s1817_s25 = scalar_select %p32_p5, %s1723_s13, %s34_s24  }
  0x10   : > { %146 = sbr.rel (!%p43_p3) target bundleno = 55 (0x37), region = 24  ;;  %s148_s26 = sand.u32 (%p43_p3), 1, %s1723_s13  }
  0x11   : > { %s1266_s27 = sshll.u32 (%p43_p3), %s1735_s16, 1  ;;  %s1264_s28 = sshll.u32 (%p43_p3), %s148_s26, 8 }
  0x12   : > { %s1471_s29 = sshll.u32 (%p43_p3), %s1739_s17, 7  ;;  %s1831_s8 = scalar_lea.vmem (%p43_p3), [#allocation3], %s1264_s28 }
  0x13   : > { %s154_s30 = sadd.s32 (%p43_p3), %s1471_s29, %s1266_s27 }
  0x14   : > { %s1268_s4 = sshll.u32 (%p43_p3), %s154_s30, 2 }
  0x15   : > { %s1826_s7 = scalar_lea.vmem %s2067_s0, %s1268_s4 }
  0x16   : > { %v247_v0 = vld [vmem:[%s1826_s7] sm:$0xff]  ;;  %v249_v1 = vld [vmem:[%s1826_s7 + $0x10] sm:$0xff] }
  0x17   : > { %v251_v2 = vld [vmem:[%s1826_s7 + $0x20] sm:$0xff]  ;;  %248 = vst [vmem:[%s1831_s8] sm:$0xff] %v247_v0  ;;  %v253_v3 = vld [vmem:[%s1826_s7 + $0x30] sm:$0xff] }
  0x18   : > { %250 = vst [vmem:[%s1831_s8 + $0x8] sm:$0xff] %v249_v1  ;;  %v255_v4 = vld [vmem:[%s1826_s7 + $0x40] sm:$0xff]  ;;  %v257_v5 = vld [vmem:[%s1826_s7 + $0x50] sm:$0xff] }
  0x19   : > { %252 = vst [vmem:[%s1831_s8 + $0x10] sm:$0xff] %v251_v2  ;;  %v259_v6 = vld [vmem:[%s1826_s7 + $0x60] sm:$0xff]  ;;  %v261_v7 = vld [vmem:[%s1826_s7 + $0x70] sm:$0xff] }
  0x1a   : > { %254 = vst [vmem:[%s1831_s8 + $0x18] sm:$0xff] %v253_v3  ;;  %v263_v8 = vld [vmem:[%s1826_s7 + $0x80] sm:$0xff]  ;;  %v265_v9 = vld [vmem:[%s1826_s7 + $0x90] sm:$0xff] }
  0x1b   : > { %256 = vst [vmem:[%s1831_s8 + $0x20] sm:$0xff] %v255_v4  ;;  %v267_v10 = vld [vmem:[%s1826_s7 + $0xa0] sm:$0xff]  ;;  %v269_v11 = vld [vmem:[%s1826_s7 + $0xb0] sm:$0xff] }
  0x1c   : > { %258 = vst [vmem:[%s1831_s8 + $0x28] sm:$0xff] %v257_v5  ;;  %v271_v12 = vld [vmem:[%s1826_s7 + $0xc0] sm:$0xff]  ;;  %v273_v13 = vld [vmem:[%s1826_s7 + $0xd0] sm:$0xff] }
  0x1d   : > { %260 = vst [vmem:[%s1831_s8 + $0x30] sm:$0xff] %v259_v6  ;;  %v275_v14 = vld [vmem:[%s1826_s7 + $0xe0] sm:$0xff]  ;;  %v277_v15 = vld [vmem:[%s1826_s7 + $0xf0] sm:$0xff] }
  0x1e   : > { %262 = vst [vmem:[%s1831_s8 + $0x38] sm:$0xff] %v261_v7  ;;  %v279_v16 = vld [vmem:[%s1826_s7 + $0x100] sm:$0xff]  ;;  %v281_v17 = vld [vmem:[%s1826_s7 + $0x110] sm:$0xff] }
  0x1f   : > { %264 = vst [vmem:[%s1831_s8 + $0x40] sm:$0xff] %v263_v8  ;;  %v283_v18 = vld [vmem:[%s1826_s7 + $0x120] sm:$0xff]  ;;  %v285_v19 = vld [vmem:[%s1826_s7 + $0x130] sm:$0xff] }
  0x20   : > { %266 = vst [vmem:[%s1831_s8 + $0x48] sm:$0xff] %v265_v9  ;;  %v287_v20 = vld [vmem:[%s1826_s7 + $0x140] sm:$0xff]  ;;  %v289_v21 = vld [vmem:[%s1826_s7 + $0x150] sm:$0xff] }
  0x21   : > { %268 = vst [vmem:[%s1831_s8 + $0x50] sm:$0xff] %v267_v10  ;;  %v291_v22 = vld [vmem:[%s1826_s7 + $0x160] sm:$0xff]  ;;  %v293_v23 = vld [vmem:[%s1826_s7 + $0x170] sm:$0xff] }
  0x22   : > { %270 = vst [vmem:[%s1831_s8 + $0x58] sm:$0xff] %v269_v11  ;;  %v295_v24 = vld [vmem:[%s1826_s7 + $0x180] sm:$0xff]  ;;  %v297_v25 = vld [vmem:[%s1826_s7 + $0x190] sm:$0xff] }
  0x23   : > { %272 = vst [vmem:[%s1831_s8 + $0x60] sm:$0xff] %v271_v12  ;;  %v299_v26 = vld [vmem:[%s1826_s7 + $0x1a0] sm:$0xff]  ;;  %v301_v27 = vld [vmem:[%s1826_s7 + $0x1b0] sm:$0xff] }
  0x24   : > { %274 = vst [vmem:[%s1831_s8 + $0x68] sm:$0xff] %v273_v13  ;;  %v303_v28 = vld [vmem:[%s1826_s7 + $0x1c0] sm:$0xff]  ;;  %v305_v29 = vld [vmem:[%s1826_s7 + $0x1d0] sm:$0xff] }
  0x25   : > { %276 = vst [vmem:[%s1831_s8 + $0x70] sm:$0xff] %v275_v14  ;;  %v307_v30 = vld [vmem:[%s1826_s7 + $0x1e0] sm:$0xff]  ;;  %v309_v31 = vld [vmem:[%s1826_s7 + $0x1f0] sm:$0xff] }
  0x26   : > { %278 = vst [vmem:[%s1831_s8 + $0x78] sm:$0xff] %v277_v15 }
  0x27   : > { %280 = vst [vmem:[%s1831_s8 + $0x80] sm:$0xff] %v279_v16 }
  0x28   : > { %282 = vst [vmem:[%s1831_s8 + $0x88] sm:$0xff] %v281_v17 }
  0x29   : > { %284 = vst [vmem:[%s1831_s8 + $0x90] sm:$0xff] %v283_v18 }
  0x2a   : > { %286 = vst [vmem:[%s1831_s8 + $0x98] sm:$0xff] %v285_v19 }
  0x2b   : > { %288 = vst [vmem:[%s1831_s8 + $0xa0] sm:$0xff] %v287_v20 }
  0x2c   : > { %290 = vst [vmem:[%s1831_s8 + $0xa8] sm:$0xff] %v289_v21 }
  0x2d   : > { %292 = vst [vmem:[%s1831_s8 + $0xb0] sm:$0xff] %v291_v22 }
  0x2e   : > { %294 = vst [vmem:[%s1831_s8 + $0xb8] sm:$0xff] %v293_v23 }
  0x2f   : > { %296 = vst [vmem:[%s1831_s8 + $0xc0] sm:$0xff] %v295_v24 }
  0x30   : > { %298 = vst [vmem:[%s1831_s8 + $0xc8] sm:$0xff] %v297_v25 }
  0x31   : > { %300 = vst [vmem:[%s1831_s8 + $0xd0] sm:$0xff] %v299_v26 }
  0x32   : > { %302 = vst [vmem:[%s1831_s8 + $0xd8] sm:$0xff] %v301_v27 }
  0x33   : > { %304 = vst [vmem:[%s1831_s8 + $0xe0] sm:$0xff] %v303_v28 }
  0x34   : > { %306 = vst [vmem:[%s1831_s8 + $0xe8] sm:$0xff] %v305_v29 }
  0x35   : > { %308 = vst [vmem:[%s1831_s8 + $0xf0] sm:$0xff] %v307_v30 }
  0x36   : > { %310 = vst [vmem:[%s1831_s8 + $0xf8] sm:$0xff] %v309_v31 }
  0x37 PF: > { %p1269_p7 = scmp.ge.s32.totalorder %s1743_s18, 1  ;;  %p324_p8 = scmp.lt.s32.totalorder %s1743_s18, 5 }
  0x39   : > { %p325_p9 = pnand %p1269_p7, %p324_p8 }
  0x3a   : > { %s331_s9 = sand.u32 (!%p325_p9), 1, %s1719_s12   ;;  %s1271_s10 = sshll.u32 (!%p325_p9), %s1727_s14, 5 }
  0x3b   : > { %328 = sbr.rel (%p325_p9) target bundleno = 421 (0x1a5), region = 66  ;;  %s1270_s11 = sshll.u32 (!%p325_p9), %s331_s9, 8 }
  0x3c   : > { %p362_p10 = scmp.lt.s32.totalorder (!%p325_p9), %s1271_s10, 63  ;;  %s1273_s21 = sshll.u32 (!%p325_p9), %s1731_s15, 5 }
  0x3d   : > { %p368_p11 = scmp.lt.s32.totalorder (!%p325_p9), %s1273_s21, 63  ;;  %s1909_s12 = scalar_lea.vmem (!%p325_p9), [#allocation3], %s1270_s11 }
  0x3e   : > { %p1275_p12 = scmp.ne.s32.totalorder (!%p325_p9), %s1727_s14, 0 }
  0x40   : > { %s2084_s10 = smov (!%p362_p10, %s1271_s10), 63  ;;  %s2086_s21 = smov (!%p368_p11, %s1273_s21), 63 }
  0x41   : > { %s1272_s22 = sshll.u32 %s2084_s10, 2  ;;  %s1274_s27 = sshll.u32 %s2086_s21, 2 }
  0x42   : > { %s1902_s26 = scalar_lea.vmem %s2068_s1, %s1272_s22  ;;  %s1907_s30 = scalar_lea.vmem %s2070_s3, %s1274_s27 }
  0x43   : > { %376 = sbr.rel (%p1275_p12) target bundleno = 105 (0x69), region = 74 }
  0x48   : > { %v1745_v32 = vmov 0.0  }
  0x49   : > { %377 = vst [vmem:[#allocation2 + $0xb0] sm:$0xff] %v1745_v32 }
  0x4a   : > { %378 = vst [vmem:[#allocation2] sm:$0xff] %v1745_v32 }
  0x4b   : > { %379 = vst [vmem:[#allocation2 + $0xd8] sm:$0xff] %v1745_v32 }
  0x4c   : > { %380 = vst [vmem:[#allocation2 + $0x18] sm:$0xff] %v1745_v32 }
  0x4d   : > { %381 = vst [vmem:[#allocation2 + $0x50] sm:$0xff] %v1745_v32 }
  0x4e   : > { %382 = vst [vmem:[#allocation2 + $0x68] sm:$0xff] %v1745_v32 }
  0x4f   : > { %383 = vst [vmem:[#allocation2 + $0x30] sm:$0xff] %v1745_v32 }
  0x50   : > { %384 = vst [vmem:[#allocation2 + $0x48] sm:$0xff] %v1745_v32 }
  0x51   : > { %385 = vst [vmem:[#allocation2 + $0x80] sm:$0xff] %v1745_v32 }
  0x52   : > { %386 = vst [vmem:[#allocation2 + $0x88] sm:$0xff] %v1745_v32 }
  0x53   : > { %387 = vst [vmem:[#allocation2 + $0xe8] sm:$0xff] %v1745_v32 }
  0x54   : > { %388 = vst [vmem:[#allocation2 + $0xb8] sm:$0xff] %v1745_v32 }
  0x55   : > { %389 = vst [vmem:[#allocation2 + $0x60] sm:$0xff] %v1745_v32 }
  0x56   : > { %390 = vst [vmem:[#allocation2 + $0xf0] sm:$0xff] %v1745_v32 }
  0x57   : > { %391 = vst [vmem:[#allocation2 + $0x8] sm:$0xff] %v1745_v32 }
  0x58   : > { %392 = vst [vmem:[#allocation2 + $0x78] sm:$0xff] %v1745_v32 }
  0x59   : > { %393 = vst [vmem:[#allocation2 + $0x38] sm:$0xff] %v1745_v32 }
  0x5a   : > { %394 = vst [vmem:[#allocation2 + $0x58] sm:$0xff] %v1745_v32 }
  0x5b   : > { %395 = vst [vmem:[#allocation2 + $0x40] sm:$0xff] %v1745_v32 }
  0x5c   : > { %396 = vst [vmem:[#allocation2 + $0xc8] sm:$0xff] %v1745_v32 }
  0x5d   : > { %397 = vst [vmem:[#allocation2 + $0xe0] sm:$0xff] %v1745_v32 }
  0x5e   : > { %398 = vst [vmem:[#allocation2 + $0x90] sm:$0xff] %v1745_v32 }
  0x5f   : > { %399 = vst [vmem:[#allocation2 + $0x70] sm:$0xff] %v1745_v32 }
  0x60   : > { %400 = vst [vmem:[#allocation2 + $0xc0] sm:$0xff] %v1745_v32 }
  0x61   : > { %401 = vst [vmem:[#allocation2 + $0xa8] sm:$0xff] %v1745_v32 }
  0x62   : > { %402 = vst [vmem:[#allocation2 + $0xd0] sm:$0xff] %v1745_v32 }
  0x63   : > { %403 = vst [vmem:[#allocation2 + $0x10] sm:$0xff] %v1745_v32 }
  0x64   : > { %404 = vst [vmem:[#allocation2 + $0x28] sm:$0xff] %v1745_v32 }
  0x65   : > { %405 = vst [vmem:[#allocation2 + $0xa0] sm:$0xff] %v1745_v32 }
  0x66   : > { %406 = vst [vmem:[#allocation2 + $0xf8] sm:$0xff] %v1745_v32 }
  0x67   : > { %407 = vst [vmem:[#allocation2 + $0x20] sm:$0xff] %v1745_v32 }
  0x68   : > { %408 = vst [vmem:[#allocation2 + $0x98] sm:$0xff] %v1745_v32 }
  0x69 PF: > { %v1511_v33 = vld [vmem:[%s1902_s26 + $0x38] sm:$0xff]  ;;  %v1510_v35 = vld [vmem:[%s1902_s26 + $0x30] sm:$0xff]  ;;  %v1509_v37 = vld [vmem:[%s1902_s26 + $0x28] sm:$0xff]  ;;  %p1468_p13 = scmp.ne.s32.totalorder %s1727_s14, 1 }
  0x6a   : > { %v1519_v34 = vld [vmem:[%s1902_s26 + $0x78] sm:$0xff]  ;;  %761 = vmatpush.bf16.msra.mxu0 %v1511_v33  ;;  %1615 = vmatpush.bf16.msra.mxu2 %v1511_v33  ;;  %v1518_v36 = vld [vmem:[%s1902_s26 + $0x70] sm:$0xff]  ;;  %v1517_v38 = vld [vmem:[%s1902_s26 + $0x68] sm:$0xff] }
  0x6b   : > { %850 = vmatpush.bf16.msra.mxu1 %v1519_v34  ;;  %1623 = vmatpush.bf16.msra.mxu3 %v1519_v34  ;;  %v1508_v39 = vld [vmem:[%s1902_s26 + $0x20] sm:$0xff]  ;;  %v1507_v41 = vld [vmem:[%s1902_s26 + $0x18] sm:$0xff]  ;;  %v1506_v43 = vld [vmem:[%s1902_s26 + $0x10] sm:$0xff] }
  0x6c   : > { %v1516_v40 = vld [vmem:[%s1902_s26 + $0x60] sm:$0xff]  ;;  %v1515_v42 = vld [vmem:[%s1902_s26 + $0x58] sm:$0xff]  ;;  %v1514_v44 = vld [vmem:[%s1902_s26 + $0x50] sm:$0xff] }
  0x6d   : > { %v1505_v45 = vld [vmem:[%s1902_s26 + $0x8] sm:$0xff]  ;;  %v1504_v47 = vld [vmem:[%s1902_s26] sm:$0xff]  ;;  %v1286_v61 = vld [vmem:[%s1909_s12 + $0x10] sm:$0xf] }
  0x6e   : > { %762 = vmatpush.bf16.msra.mxu0 %v1510_v35  ;;  %1616 = vmatpush.bf16.msra.mxu2 %v1510_v35  ;;  %v1513_v46 = vld [vmem:[%s1902_s26 + $0x48] sm:$0xff]  ;;  %v1512_v48 = vld [vmem:[%s1902_s26 + $0x40] sm:$0xff]  ;;  %v1475_v62 = vld [vmem:[%s1909_s12 + $0x14] sm:$0xf0] }
  0x6f   : > { %851 = vmatpush.bf16.msra.mxu1 %v1518_v36  ;;  %1624 = vmatpush.bf16.msra.mxu3 %v1518_v36  ;;  %v1278_v49 = vld [vmem:[%s1909_s12] sm:$0xf]  ;;  %v1473_v50 = vld [vmem:[%s1909_s12 + $0x4] sm:$0xf0]  ;;  %v1472_v53 = vld [vmem:[%s1909_s12 + $0x4] sm:$0xf]  ;;  %v1287_v5 = vor.u32 %v1475_v62, %v1286_v61 }
  0x70   : > { %v1342_v51 = vld [vmem:[%s1909_s12 + $0x80] sm:$0xf]  ;;  %v1489_v52 = vld [vmem:[%s1909_s12 + $0x84] sm:$0xf0]  ;;  %v1280_v54 = vld [vmem:[%s1909_s12 + $0x8] sm:$0xf0]  ;;  %v1279_v57 = vor.u32 %v1473_v50, %v1278_v49 }
  0x71   : > { %v1488_v55 = vld [vmem:[%s1909_s12 + $0x84] sm:$0xf]  ;;  %v1344_v56 = vld [vmem:[%s1909_s12 + $0x88] sm:$0xf0]  ;;  %v1343_v58 = vor.u32 %v1489_v52, %v1342_v51  ;;  %v1283_v59 = vor.u32 %v1472_v53, %v1280_v54  ;;  %v1350_v63 = vld [vmem:[%s1909_s12 + $0x90] sm:$0xf] }
  0x72   : > { %763 = vmatpush.bf16.msra.mxu0 %v1509_v37  ;;  %1617 = vmatpush.bf16.msra.mxu2 %v1509_v37  ;;  %v1347_v60 = vor.u32 %v1488_v55, %v1344_v56  ;;  %v1491_v0 = vld [vmem:[%s1909_s12 + $0x94] sm:$0xf0]  ;;  %v1474_v1 = vld [vmem:[%s1909_s12 + $0x14] sm:$0xf]  ;;  %v1288_v2 = vld [vmem:[%s1909_s12 + $0x18] sm:$0xf0] }
  0x73   : > { %852 = vmatpush.bf16.msra.mxu1 %v1517_v38  ;;  %1625 = vmatpush.bf16.msra.mxu3 %v1517_v38  ;;  %v1490_v3 = vld [vmem:[%s1909_s12 + $0x94] sm:$0xf]  ;;  %v1352_v4 = vld [vmem:[%s1909_s12 + $0x98] sm:$0xf0]  ;;  %v1351_v6 = vor.u32 %v1491_v0, %v1350_v63  ;;  %v1291_v7 = vor.u32 %v1474_v1, %v1288_v2  ;;  %v1294_v9 = vld [vmem:[%s1909_s12 + $0x20] sm:$0xf] }
  0x74   : > { %v1355_v8 = vor.u32 %v1490_v3, %v1352_v4  ;;  %v1477_v10 = vld [vmem:[%s1909_s12 + $0x24] sm:$0xf0]  ;;  %v1358_v11 = vld [vmem:[%s1909_s12 + $0xa0] sm:$0xf]  ;;  %v1476_v13 = vld [vmem:[%s1909_s12 + $0x24] sm:$0xf] }
  0x75   : > { %v1493_v12 = vld [vmem:[%s1909_s12 + $0xa4] sm:$0xf0]  ;;  %v1296_v14 = vld [vmem:[%s1909_s12 + $0x28] sm:$0xf0]  ;;  %v1492_v15 = vld [vmem:[%s1909_s12 + $0xa4] sm:$0xf]  ;;  %v1295_v17 = vor.u32 %v1477_v10, %v1294_v9 }
  0x76   : > { %764 = vmatpush.bf16.msra.mxu0 %v1508_v39  ;;  %1618 = vmatpush.bf16.msra.mxu2 %v1508_v39  ;;  %v1360_v16 = vld [vmem:[%s1909_s12 + $0xa8] sm:$0xf0]  ;;  %v1359_v18 = vor.u32 %v1493_v12, %v1358_v11  ;;  %v1299_v19 = vor.u32 %v1476_v13, %v1296_v14  ;;  %v1302_v21 = vld [vmem:[%s1909_s12 + $0x30] sm:$0xf]  ;;  %v1479_v22 = vld [vmem:[%s1909_s12 + $0x34] sm:$0xf0] }
  0x77   : > { %853 = vmatpush.bf16.msra.mxu1 %v1516_v40  ;;  %1626 = vmatpush.bf16.msra.mxu3 %v1516_v40  ;;  %v1363_v20 = vor.u32 %v1492_v15, %v1360_v16  ;;  %v1366_v23 = vld [vmem:[%s1909_s12 + $0xb0] sm:$0xf]  ;;  %v1495_v24 = vld [vmem:[%s1909_s12 + $0xb4] sm:$0xf0]  ;;  %v1478_v25 = vld [vmem:[%s1909_s12 + $0x34] sm:$0xf]  ;;  %v1303_v29 = vor.u32 %v1479_v22, %v1302_v21 }
  0x78   : > { %v1304_v26 = vld [vmem:[%s1909_s12 + $0x38] sm:$0xf0]  ;;  %v1494_v27 = vld [vmem:[%s1909_s12 + $0xb4] sm:$0xf]  ;;  %v1367_v30 = vor.u32 %v1495_v24, %v1366_v23  ;;  %v1310_v33 = vld [vmem:[%s1909_s12 + $0x40] sm:$0xf] }
  0x79   : > { %v1368_v28 = vld [vmem:[%s1909_s12 + $0xb8] sm:$0xf0]  ;;  %v1307_v31 = vor.u32 %v1478_v25, %v1304_v26  ;;  %v1481_v34 = vld [vmem:[%s1909_s12 + $0x44] sm:$0xf0]  ;;  %v1374_v35 = vld [vmem:[%s1909_s12 + $0xc0] sm:$0xf] }
  0x7a   : > { %765 = vmatpush.bf16.msra.mxu0 %v1507_v41  ;;  %1619 = vmatpush.bf16.msra.mxu2 %v1507_v41  ;;  %v1371_v32 = vor.u32 %v1494_v27, %v1368_v28  ;;  %v1497_v36 = vld [vmem:[%s1909_s12 + $0xc4] sm:$0xf0]  ;;  %v1480_v37 = vld [vmem:[%s1909_s12 + $0x44] sm:$0xf]  ;;  %v1312_v38 = vld [vmem:[%s1909_s12 + $0x48] sm:$0xf0]  ;;  %v1311_v41 = vor.u32 %v1481_v34, %v1310_v33 }
  0x7b   : > { %854 = vmatpush.bf16.msra.mxu1 %v1515_v42  ;;  %1627 = vmatpush.bf16.msra.mxu3 %v1515_v42  ;;  %v1496_v39 = vld [vmem:[%s1909_s12 + $0xc4] sm:$0xf]  ;;  %v1376_v40 = vld [vmem:[%s1909_s12 + $0xc8] sm:$0xf0]  ;;  %v1375_v42 = vor.u32 %v1497_v36, %v1374_v35  ;;  %v1482_v49 = vld [vmem:[%s1909_s12 + $0x54] sm:$0xf] }
  0x7c   : > { %v1320_v50 = vld [vmem:[%s1909_s12 + $0x58] sm:$0xf0]  ;;  %v1498_v51 = vld [vmem:[%s1909_s12 + $0xd4] sm:$0xf]  ;;  %v1484_v61 = vld [vmem:[%s1909_s12 + $0x64] sm:$0xf] }
  0x7d   : > { %v1384_v52 = vld [vmem:[%s1909_s12 + $0xd8] sm:$0xf0]  ;;  %v1323_v55 = vor.u32 %v1482_v49, %v1320_v50  ;;  %v1328_v62 = vld [vmem:[%s1909_s12 + $0x68] sm:$0xf0]  ;;  %v1500_v63 = vld [vmem:[%s1909_s12 + $0xe4] sm:$0xf] }
  0x7e   : > { %766 = vmatpush.bf16.msra.mxu0 %v1506_v43  ;;  %1620 = vmatpush.bf16.msra.mxu2 %v1506_v43  ;;  %v1315_v43 = vor.u32 %v1480_v37, %v1312_v38  ;;  %v1387_v56 = vor.u32 %v1498_v51, %v1384_v52  ;;  %v1392_v0 = vld [vmem:[%s1909_s12 + $0xe8] sm:$0xf0]  ;;  %v1331_v3 = vor.u32 %v1484_v61, %v1328_v62  ;;  %v1486_v9 = vld [vmem:[%s1909_s12 + $0x74] sm:$0xf]  ;;  %v1336_v10 = vld [vmem:[%s1909_s12 + $0x78] sm:$0xf0] }
  0x7f   : > { %855 = vmatpush.bf16.msra.mxu1 %v1514_v44  ;;  %1628 = vmatpush.bf16.msra.mxu3 %v1514_v44  ;;  %v1379_v44 = vor.u32 %v1496_v39, %v1376_v40  ;;  %v1395_v4 = vor.u32 %v1500_v63, %v1392_v0  ;;  %v1502_v11 = vld [vmem:[%s1909_s12 + $0xf4] sm:$0xf]  ;;  %v1400_v12 = vld [vmem:[%s1909_s12 + $0xf8] sm:$0xf0]  ;;  %v1339_v15 = vor.u32 %v1486_v9, %v1336_v10  ;;  %v410_v27 = vld [vmem:[#allocation2] sm:$0xff] }
  0x80   : > { %v1403_v16 = vor.u32 %v1502_v11, %v1400_v12  ;;  %v425_v23 = vld [vmem:[#allocation2 + $0x38] sm:$0xff]  ;;  %v429_v63 = vld [vmem:[#allocation2 + $0xe0] sm:$0xff]  ;;  %v430_v9 = vld [vmem:[#allocation2 + $0x90] sm:$0xff] }
  0x81   : > { %v426_v33 = vld [vmem:[#allocation2 + $0x58] sm:$0xff] }
  0x82   : > { %767 = vmatpush.bf16.msra.mxu0 %v1505_v45  ;;  %1621 = vmatpush.bf16.msra.mxu2 %v1505_v45  ;;  %v1318_v45 = vld [vmem:[%s1909_s12 + $0x50] sm:$0xf]  ;;  %v411_v37 = vld [vmem:[#allocation2 + $0xd8] sm:$0xff] }
  0x83   : > { %856 = vmatpush.bf16.msra.mxu1 %v1513_v46  ;;  %1629 = vmatpush.bf16.msra.mxu3 %v1513_v46  ;;  %v1483_v46 = vld [vmem:[%s1909_s12 + $0x54] sm:$0xf0] }
  0x84   : > { %v1319_v53 = vor.u32 %v1483_v46, %v1318_v45 }
  0x86   : > { %768 = vmatpush.bf16.msra.mxu0 %v1504_v47  ;;  %1622 = vmatpush.bf16.msra.mxu2 %v1504_v47  ;;  %v1382_v47 = vld [vmem:[%s1909_s12 + $0xd0] sm:$0xf] }
  0x87   : > { %857 = vmatpush.bf16.msra.mxu1 %v1512_v48  ;;  %1630 = vmatpush.bf16.msra.mxu3 %v1512_v48  ;;  %v1499_v48 = vld [vmem:[%s1909_s12 + $0xd4] sm:$0xf0] }
  0x88   : > { %v1383_v54 = vor.u32 %v1499_v48, %v1382_v47  ;;  %v412_v47 = vld [vmem:[#allocation2 + $0x18] sm:$0xff] }
  0x89   : > { %769 = vmatmul.bf16.vlgmr.msra.gmra.mxu0 %v1279_v57  ;;  %809 = vmatmul.bf16.vlgmr.msra.gmra.mxu2 %v1343_v58  ;;  %v1326_v57 = vld [vmem:[%s1909_s12 + $0x60] sm:$0xf]  ;;  %v1485_v58 = vld [vmem:[%s1909_s12 + $0x64] sm:$0xf0] }
  0x8a   : > { %858 = vmatmul.bf16.vlgmr.msra.gmra.mxu1 %v1283_v59  ;;  %898 = vmatmul.bf16.vlgmr.msra.gmra.mxu3 %v1347_v60  ;;  %v1390_v59 = vld [vmem:[%s1909_s12 + $0xe0] sm:$0xf]  ;;  %v1501_v60 = vld [vmem:[%s1909_s12 + $0xe4] sm:$0xf0]  ;;  %v1327_v1 = vor.u32 %v1485_v58, %v1326_v57  ;;  %v413_v57 = vld [vmem:[#allocation2 + $0x50] sm:$0xff] }
  0x8b   : > { %v1391_v2 = vor.u32 %v1501_v60, %v1390_v59 }
  0x99   : > { %774 = vmatmul.bf16.gmra.mxu0 %v1287_v5  ;;  %814 = vmatmul.bf16.gmra.mxu2 %v1351_v6  ;;  %v1334_v5 = vld [vmem:[%s1909_s12 + $0x70] sm:$0xf]  ;;  %v1487_v6 = vld [vmem:[%s1909_s12 + $0x74] sm:$0xf0] }
  0x9a   : > { %863 = vmatmul.bf16.gmra.mxu1 %v1291_v7  ;;  %903 = vmatmul.bf16.gmra.mxu3 %v1355_v8  ;;  %v1398_v7 = vld [vmem:[%s1909_s12 + $0xf0] sm:$0xf]  ;;  %v1503_v8 = vld [vmem:[%s1909_s12 + $0xf4] sm:$0xf0]  ;;  %v1335_v13 = vor.u32 %v1487_v6, %v1334_v5 }
  0x9b   : > { %v1399_v14 = vor.u32 %v1503_v8, %v1398_v7 }
  0xa9   : > { %779 = vmatmul.bf16.gmra.mxu0 %v1295_v17  ;;  %819 = vmatmul.bf16.gmra.mxu2 %v1359_v18  ;;  %v409_v18 = vld [vmem:[#allocation2 + $0xb0] sm:$0xff] }
  0xaa   : > { %868 = vmatmul.bf16.gmra.mxu1 %v1299_v19  ;;  %908 = vmatmul.bf16.gmra.mxu3 %v1363_v20 }
  0xb9   : > { %784 = vmatmul.bf16.gmra.mxu0 %v1303_v29  ;;  %824 = vmatmul.bf16.gmra.mxu2 %v1367_v30 }
  0xba   : > { %873 = vmatmul.bf16.gmra.mxu1 %v1307_v31  ;;  %913 = vmatmul.bf16.gmra.mxu3 %v1371_v32 }
  0xc9   : > { %789 = vmatmul.bf16.gmra.mxu0 %v1311_v41  ;;  %829 = vmatmul.bf16.gmra.mxu2 %v1375_v42 }
  0xca   : > { %878 = vmatmul.bf16.gmra.mxu1 %v1315_v43  ;;  %918 = vmatmul.bf16.gmra.mxu3 %v1379_v44  ;;  %v427_v43 = vld [vmem:[#allocation2 + $0x40] sm:$0xff] }
  0xd9   : > { %794 = vmatmul.bf16.gmra.mxu0 %v1319_v53  ;;  %834 = vmatmul.bf16.gmra.mxu2 %v1383_v54  ;;  %v428_v53 = vld [vmem:[#allocation2 + $0xc8] sm:$0xff] }
  0xda   : > { %883 = vmatmul.bf16.gmra.mxu1 %v1323_v55  ;;  %923 = vmatmul.bf16.gmra.mxu3 %v1387_v56 }
  0xe9   : > { %799 = vmatmul.bf16.gmra.mxu0 %v1327_v1  ;;  %839 = vmatmul.bf16.gmra.mxu2 %v1391_v2 }
  0xea   : > { %888 = vmatmul.bf16.gmra.mxu1 %v1331_v3  ;;  %928 = vmatmul.bf16.gmra.mxu3 %v1395_v4  ;;  %v414_v3 = vld [vmem:[#allocation2 + $0x68] sm:$0xff] }
  0xf9   : > { %804 = vmatmul.bf16.gmra.mxu0 %v1335_v13  ;;  %844 = vmatmul.bf16.gmra.mxu2 %v1399_v14  ;;  %v415_v13 = vld [vmem:[#allocation2 + $0x30] sm:$0xff] }
  0xfa   : > { %893 = vmatmul.bf16.gmra.mxu1 %v1339_v15  ;;  %933 = vmatmul.bf16.gmra.mxu3 %v1403_v16 }
 0x106   : > { %v770_v17 = vpop.f32.mrf.mxu0 }
 0x107   : > { %v859_v19 = vpop.f32.mrf.mxu1 }
 0x108   : > { %v860_v20 = vadd.f32 %v859_v19, %v770_v17  ;;  %v431_v19 = vld [vmem:[#allocation2 + $0x70] sm:$0xff] }
 0x10a   : > { %v939_v21 = vadd.f32 %v860_v20, %v409_v18 }
 0x10c   : > { %971 = vst [vmem:[#allocation2 + $0xb0] sm:$0xff] %v939_v21  ;;  %v810_v22 = vpop.f32.mrf.mxu2 }
 0x10d   : > { %v899_v24 = vpop.f32.mrf.mxu3 }
 0x10e   : > { %v900_v25 = vadd.f32 %v899_v24, %v810_v22  ;;  %v772_v26 = vpop.f32.mrf.mxu0 }
 0x10f   : > { %v861_v28 = vpop.f32.mrf.mxu1 }
 0x110   : > { %v955_v29 = vadd.f32 %v900_v25, %v425_v23  ;;  %v862_v30 = vadd.f32 %v861_v28, %v772_v26  ;;  %v416_v23 = vld [vmem:[#allocation2 + $0x48] sm:$0xff] }
 0x112   : > { %987 = vst [vmem:[#allocation2 + $0x38] sm:$0xff] %v955_v29  ;;  %v940_v31 = vadd.f32 %v862_v30, %v410_v27  ;;  %v432_v29 = vld [vmem:[#allocation2 + $0xc0] sm:$0xff] }
 0x114   : > { %972 = vst [vmem:[#allocation2] sm:$0xff] %v940_v31  ;;  %v812_v32 = vpop.f32.mrf.mxu2 }
 0x115   : > { %v901_v34 = vpop.f32.mrf.mxu3 }
 0x116   : > { %v902_v35 = vadd.f32 %v901_v34, %v812_v32  ;;  %v775_v36 = vpop.f32.mrf.mxu0 }
 0x117   : > { %v864_v38 = vpop.f32.mrf.mxu1 }
 0x118   : > { %v956_v39 = vadd.f32 %v902_v35, %v426_v33  ;;  %v865_v40 = vadd.f32 %v864_v38, %v775_v36  ;;  %v417_v33 = vld [vmem:[#allocation2 + $0x80] sm:$0xff] }
 0x11a   : > { %988 = vst [vmem:[#allocation2 + $0x58] sm:$0xff] %v956_v39  ;;  %v941_v41 = vadd.f32 %v865_v40, %v411_v37  ;;  %v433_v39 = vld [vmem:[#allocation2 + $0xa8] sm:$0xff] }
 0x11c   : > { %973 = vst [vmem:[#allocation2 + $0xd8] sm:$0xff] %v941_v41  ;;  %v815_v42 = vpop.f32.mrf.mxu2 }
 0x11d   : > { %v904_v44 = vpop.f32.mrf.mxu3 }
 0x11e   : > { %v905_v45 = vadd.f32 %v904_v44, %v815_v42  ;;  %v777_v46 = vpop.f32.mrf.mxu0 }
 0x11f   : > { %v866_v48 = vpop.f32.mrf.mxu1 }
 0x120   : > { %v957_v49 = vadd.f32 %v905_v45, %v427_v43  ;;  %v867_v50 = vadd.f32 %v866_v48, %v777_v46  ;;  %v418_v43 = vld [vmem:[#allocation2 + $0x88] sm:$0xff] }
 0x122   : > { %989 = vst [vmem:[#allocation2 + $0x40] sm:$0xff] %v957_v49  ;;  %v942_v51 = vadd.f32 %v867_v50, %v412_v47  ;;  %v434_v49 = vld [vmem:[#allocation2 + $0xd0] sm:$0xff] }
 0x124   : > { %974 = vst [vmem:[#allocation2 + $0x18] sm:$0xff] %v942_v51  ;;  %v817_v52 = vpop.f32.mrf.mxu2 }
 0x125   : > { %v906_v54 = vpop.f32.mrf.mxu3 }
 0x126   : > { %v907_v55 = vadd.f32 %v906_v54, %v817_v52  ;;  %v780_v56 = vpop.f32.mrf.mxu0 }
 0x127   : > { %v869_v58 = vpop.f32.mrf.mxu1 }
 0x128   : > { %v958_v59 = vadd.f32 %v907_v55, %v428_v53  ;;  %v870_v60 = vadd.f32 %v869_v58, %v780_v56  ;;  %v419_v53 = vld [vmem:[#allocation2 + $0xe8] sm:$0xff] }
 0x12a   : > { %990 = vst [vmem:[#allocation2 + $0xc8] sm:$0xff] %v958_v59  ;;  %v943_v61 = vadd.f32 %v870_v60, %v413_v57  ;;  %v435_v59 = vld [vmem:[#allocation2 + $0x10] sm:$0xff] }
 0x12c   : > { %975 = vst [vmem:[#allocation2 + $0x50] sm:$0xff] %v943_v61  ;;  %v820_v62 = vpop.f32.mrf.mxu2 }
 0x12d   : > { %v909_v0 = vpop.f32.mrf.mxu3 }
 0x12e   : > { %v910_v1 = vadd.f32 %v909_v0, %v820_v62  ;;  %v782_v2 = vpop.f32.mrf.mxu0 }
 0x12f   : > { %v871_v4 = vpop.f32.mrf.mxu1 }
 0x130   : > { %v959_v5 = vadd.f32 %v910_v1, %v429_v63  ;;  %v872_v6 = vadd.f32 %v871_v4, %v782_v2  ;;  %v420_v63 = vld [vmem:[#allocation2 + $0xb8] sm:$0xff] }
 0x132   : > { %991 = vst [vmem:[#allocation2 + $0xe0] sm:$0xff] %v959_v5  ;;  %v944_v7 = vadd.f32 %v872_v6, %v414_v3  ;;  %v436_v5 = vld [vmem:[#allocation2 + $0x28] sm:$0xff] }
 0x134   : > { %976 = vst [vmem:[#allocation2 + $0x68] sm:$0xff] %v944_v7  ;;  %v822_v8 = vpop.f32.mrf.mxu2 }
 0x135   : > { %v911_v10 = vpop.f32.mrf.mxu3 }
 0x136   : > { %v912_v11 = vadd.f32 %v911_v10, %v822_v8  ;;  %v785_v12 = vpop.f32.mrf.mxu0 }
 0x137   : > { %v874_v14 = vpop.f32.mrf.mxu1 }
 0x138   : > { %v960_v15 = vadd.f32 %v912_v11, %v430_v9  ;;  %v875_v16 = vadd.f32 %v874_v14, %v785_v12  ;;  %v421_v9 = vld [vmem:[#allocation2 + $0x60] sm:$0xff] }
 0x13a   : > { %992 = vst [vmem:[#allocation2 + $0x90] sm:$0xff] %v960_v15  ;;  %v945_v17 = vadd.f32 %v875_v16, %v415_v13  ;;  %v437_v15 = vld [vmem:[#allocation2 + $0xa0] sm:$0xff] }
 0x13c   : > { %977 = vst [vmem:[#allocation2 + $0x30] sm:$0xff] %v945_v17  ;;  %v825_v18 = vpop.f32.mrf.mxu2 }
 0x13d   : > { %v914_v20 = vpop.f32.mrf.mxu3 }
 0x13e   : > { %v915_v21 = vadd.f32 %v914_v20, %v825_v18  ;;  %v787_v22 = vpop.f32.mrf.mxu0 }
 0x13f   : > { %v876_v24 = vpop.f32.mrf.mxu1 }
 0x140   : > { %v961_v25 = vadd.f32 %v915_v21, %v431_v19  ;;  %v877_v26 = vadd.f32 %v876_v24, %v787_v22  ;;  %v422_v19 = vld [vmem:[#allocation2 + $0xf0] sm:$0xff] }
 0x142   : > { %993 = vst [vmem:[#allocation2 + $0x70] sm:$0xff] %v961_v25  ;;  %v946_v27 = vadd.f32 %v877_v26, %v416_v23  ;;  %v438_v25 = vld [vmem:[#allocation2 + $0xf8] sm:$0xff] }
 0x144   : > { %978 = vst [vmem:[#allocation2 + $0x48] sm:$0xff] %v946_v27  ;;  %v827_v28 = vpop.f32.mrf.mxu2 }
 0x145   : > { %v916_v30 = vpop.f32.mrf.mxu3 }
 0x146   : > { %v917_v31 = vadd.f32 %v916_v30, %v827_v28  ;;  %v790_v32 = vpop.f32.mrf.mxu0 }
 0x147   : > { %v879_v34 = vpop.f32.mrf.mxu1 }
 0x148   : > { %v962_v35 = vadd.f32 %v917_v31, %v432_v29  ;;  %v880_v36 = vadd.f32 %v879_v34, %v790_v32  ;;  %v423_v29 = vld [vmem:[#allocation2 + $0x8] sm:$0xff] }
 0x14a   : > { %994 = vst [vmem:[#allocation2 + $0xc0] sm:$0xff] %v962_v35  ;;  %v947_v37 = vadd.f32 %v880_v36, %v417_v33  ;;  %v439_v35 = vld [vmem:[#allocation2 + $0x20] sm:$0xff] }
 0x14c   : > { %979 = vst [vmem:[#allocation2 + $0x80] sm:$0xff] %v947_v37  ;;  %v830_v38 = vpop.f32.mrf.mxu2 }
 0x14d   : > { %v919_v40 = vpop.f32.mrf.mxu3 }
 0x14e   : > { %v920_v41 = vadd.f32 %v919_v40, %v830_v38  ;;  %v792_v42 = vpop.f32.mrf.mxu0 }
 0x14f   : > { %v881_v44 = vpop.f32.mrf.mxu1 }
 0x150   : > { %v963_v45 = vadd.f32 %v920_v41, %v433_v39  ;;  %v882_v46 = vadd.f32 %v881_v44, %v792_v42  ;;  %v424_v39 = vld [vmem:[#allocation2 + $0x78] sm:$0xff] }
 0x152   : > { %995 = vst [vmem:[#allocation2 + $0xa8] sm:$0xff] %v963_v45  ;;  %v948_v47 = vadd.f32 %v882_v46, %v418_v43  ;;  %v440_v45 = vld [vmem:[#allocation2 + $0x98] sm:$0xff] }
 0x154   : > { %980 = vst [vmem:[#allocation2 + $0x88] sm:$0xff] %v948_v47  ;;  %v832_v48 = vpop.f32.mrf.mxu2 }
 0x155   : > { %v921_v50 = vpop.f32.mrf.mxu3 }
 0x156   : > { %v922_v51 = vadd.f32 %v921_v50, %v832_v48  ;;  %v795_v52 = vpop.f32.mrf.mxu0 }
 0x157   : > { %v884_v54 = vpop.f32.mrf.mxu1 }
 0x158   : > { %v964_v55 = vadd.f32 %v922_v51, %v434_v49  ;;  %v885_v56 = vadd.f32 %v884_v54, %v795_v52 }
 0x15a   : > { %996 = vst [vmem:[#allocation2 + $0xd0] sm:$0xff] %v964_v55  ;;  %v949_v57 = vadd.f32 %v885_v56, %v419_v53 }
 0x15c   : > { %981 = vst [vmem:[#allocation2 + $0xe8] sm:$0xff] %v949_v57  ;;  %v835_v58 = vpop.f32.mrf.mxu2 }
 0x15d   : > { %v924_v60 = vpop.f32.mrf.mxu3 }
 0x15e   : > { %v925_v61 = vadd.f32 %v924_v60, %v835_v58  ;;  %v797_v62 = vpop.f32.mrf.mxu0 }
 0x15f   : > { %v886_v0 = vpop.f32.mrf.mxu1 }
 0x160   : > { %v965_v1 = vadd.f32 %v925_v61, %v435_v59  ;;  %v887_v2 = vadd.f32 %v886_v0, %v797_v62 }
 0x162   : > { %997 = vst [vmem:[#allocation2 + $0x10] sm:$0xff] %v965_v1  ;;  %v950_v3 = vadd.f32 %v887_v2, %v420_v63 }
 0x164   : > { %982 = vst [vmem:[#allocation2 + $0xb8] sm:$0xff] %v950_v3  ;;  %v837_v4 = vpop.f32.mrf.mxu2 }
 0x165   : > { %v926_v6 = vpop.f32.mrf.mxu3 }
 0x166   : > { %v927_v7 = vadd.f32 %v926_v6, %v837_v4  ;;  %v800_v8 = vpop.f32.mrf.mxu0 }
 0x167   : > { %v889_v10 = vpop.f32.mrf.mxu1 }
 0x168   : > { %v966_v11 = vadd.f32 %v927_v7, %v436_v5  ;;  %v890_v12 = vadd.f32 %v889_v10, %v800_v8 }
 0x16a   : > { %998 = vst [vmem:[#allocation2 + $0x28] sm:$0xff] %v966_v11  ;;  %v951_v13 = vadd.f32 %v890_v12, %v421_v9 }
 0x16c   : > { %983 = vst [vmem:[#allocation2 + $0x60] sm:$0xff] %v951_v13  ;;  %v840_v14 = vpop.f32.mrf.mxu2 }
 0x16d   : > { %v929_v16 = vpop.f32.mrf.mxu3 }
 0x16e   : > { %v930_v17 = vadd.f32 %v929_v16, %v840_v14  ;;  %v802_v18 = vpop.f32.mrf.mxu0 }
 0x16f   : > { %v891_v20 = vpop.f32.mrf.mxu1 }
 0x170   : > { %v967_v21 = vadd.f32 %v930_v17, %v437_v15  ;;  %v892_v22 = vadd.f32 %v891_v20, %v802_v18 }
 0x172   : > { %999 = vst [vmem:[#allocation2 + $0xa0] sm:$0xff] %v967_v21  ;;  %v952_v23 = vadd.f32 %v892_v22, %v422_v19 }
 0x174   : > { %984 = vst [vmem:[#allocation2 + $0xf0] sm:$0xff] %v952_v23  ;;  %v842_v24 = vpop.f32.mrf.mxu2 }
 0x175   : > { %v931_v26 = vpop.f32.mrf.mxu3 }
 0x176   : > { %v932_v27 = vadd.f32 %v931_v26, %v842_v24  ;;  %v805_v28 = vpop.f32.mrf.mxu0 }
 0x177   : > { %v894_v30 = vpop.f32.mrf.mxu1 }
 0x178   : > { %v968_v31 = vadd.f32 %v932_v27, %v438_v25  ;;  %v895_v32 = vadd.f32 %v894_v30, %v805_v28 }
 0x17a   : > { %1000 = vst [vmem:[#allocation2 + $0xf8] sm:$0xff] %v968_v31  ;;  %v953_v33 = vadd.f32 %v895_v32, %v423_v29 }
 0x17c   : > { %985 = vst [vmem:[#allocation2 + $0x8] sm:$0xff] %v953_v33  ;;  %v845_v34 = vpop.f32.mrf.mxu2 }
 0x17d   : > { %v934_v36 = vpop.f32.mrf.mxu3 }
 0x17e   : > { %v935_v37 = vadd.f32 %v934_v36, %v845_v34  ;;  %v807_v38 = vpop.f32.mrf.mxu0 }
 0x17f   : > { %v896_v40 = vpop.f32.mrf.mxu1 }
 0x180   : > { %v969_v41 = vadd.f32 %v935_v37, %v439_v35  ;;  %v897_v42 = vadd.f32 %v896_v40, %v807_v38 }
 0x182   : > { %1001 = vst [vmem:[#allocation2 + $0x20] sm:$0xff] %v969_v41  ;;  %v954_v43 = vadd.f32 %v897_v42, %v424_v39 }
 0x184   : > { %986 = vst [vmem:[#allocation2 + $0x78] sm:$0xff] %v954_v43  ;;  %v847_v44 = vpop.f32.mrf.mxu2 }
 0x185   : > { %v936_v46 = vpop.f32.mrf.mxu3 }
 0x186   : > { %v937_v47 = vadd.f32 %v936_v46, %v847_v44  ;;  %1006 = sbr.rel (%p1468_p13) target bundleno = 421 (0x1a5), region = 78 }
 0x188   : > { %v970_v48 = vadd.f32 %v937_v47, %v440_v45 }
 0x18a   : > { %1002 = vst [vmem:[#allocation2 + $0x98] sm:$0xff] %v970_v48 }
 0x18b   : > { %v1007_v49 = vld [vmem:[#allocation2 + $0xb0] sm:$0xff]  ;;  %v1008_v50 = vld [vmem:[#allocation2] sm:$0xff]  ;;  %v1009_v52 = vld [vmem:[#allocation2 + $0xd8] sm:$0xff] }
 0x18c   : > { %v1996_v51 = vld [vmem:[%s2069_s2] ss:$0 sm:$0xff]  ;;  %v1010_v53 = vld [vmem:[#allocation2 + $0x18] sm:$0xff]  ;;  %v1011_v54 = vld [vmem:[#allocation2 + $0x50] sm:$0xff] }
 0x18d   : > { %v1012_v55 = vld [vmem:[#allocation2 + $0x68] sm:$0xff]  ;;  %v1013_v56 = vld [vmem:[#allocation2 + $0x30] sm:$0xff]  ;;  %v1043_v57 = vadd.f32 %v1996_v51, %v1007_v49  ;;  %v1044_v58 = vadd.f32 %v1996_v51, %v1008_v50  ;;  %v1045_v59 = vadd.f32 %v1996_v51, %v1009_v52  ;;  %v1046_v60 = vadd.f32 %v1996_v51, %v1010_v53  ;;  %v1015_v2 = vld [vmem:[#allocation2 + $0x80] sm:$0xff] }
 0x18e   : > { %v1014_v61 = vld [vmem:[#allocation2 + $0x48] sm:$0xff]  ;;  %v1047_v62 = vadd.f32 %v1996_v51, %v1011_v54  ;;  %v1048_v63 = vadd.f32 %v1996_v51, %v1012_v55  ;;  %v1049_v0 = vadd.f32 %v1996_v51, %v1013_v56  ;;  %v1018_v9 = vld [vmem:[#allocation2 + $0xb8] sm:$0xff]  ;;  %v1019_v14 = vld [vmem:[#allocation2 + $0x60] sm:$0xff]  ;;  %v1051_v18 = vadd.f32 %v1996_v51, %v1015_v2 }
 0x18f   : > { %v1050_v1 = vadd.f32 %v1996_v51, %v1014_v61  ;;  %v1016_v3 = vld [vmem:[#allocation2 + $0x88] sm:$0xff]  ;;  %v1075_v4 = vmax.f32 %v1043_v57, 0.0  ;;  %v1076_v5 = vmax.f32 %v1044_v58, 0.0  ;;  %v1077_v6 = vmax.f32 %v1045_v59, 0.0  ;;  %v1020_v15 = vld [vmem:[#allocation2 + $0xf0] sm:$0xff]  ;;  %v1022_v21 = vld [vmem:[#allocation2 + $0x78] sm:$0xff] }
 0x190   : > { %v1078_v7 = vmax.f32 %v1046_v60, 0.0  ;;  %v1017_v8 = vld [vmem:[#allocation2 + $0xe8] sm:$0xff]  ;;  %v1079_v10 = vmax.f32 %v1047_v62, 0.0  ;;  %v1080_v11 = vmax.f32 %v1048_v63, 0.0  ;;  %v1081_v12 = vmax.f32 %v1049_v0, 0.0  ;;  %v1023_v26 = vld [vmem:[#allocation2 + $0x38] sm:$0xff] }
 0x191   : > { %v1082_v13 = vmax.f32 %v1050_v1, 0.0  ;;  %v1523_v16 = vpack.c.bf16 %v1076_v5, %v1075_v4  ;;  %v1052_v19 = vadd.f32 %v1996_v51, %v1016_v3  ;;  %v1021_v20 = vld [vmem:[#allocation2 + $0x8] sm:$0xff]  ;;  %v1053_v24 = vadd.f32 %v1996_v51, %v1017_v8  ;;  %v1024_v31 = vld [vmem:[#allocation2 + $0x58] sm:$0xff]  ;;  %v1025_v36 = vld [vmem:[#allocation2 + $0x40] sm:$0xff] }
 0x192   : > { %v1528_v17 = vpack.c.bf16 %v1078_v7, %v1077_v6  ;;  %v1533_v22 = vpack.c.bf16 %v1080_v11, %v1079_v10  ;;  %v1054_v25 = vadd.f32 %v1996_v51, %v1018_v9  ;;  %v1083_v27 = vmax.f32 %v1051_v18, 0.0  ;;  %v1026_v37 = vld [vmem:[#allocation2 + $0xc8] sm:$0xff]  ;;  %v1027_v42 = vld [vmem:[#allocation2 + $0xe0] sm:$0xff]  ;;  %v1028_v43 = vld [vmem:[#allocation2 + $0x90] sm:$0xff] }
 0x193   : > { %v1538_v23 = vpack.c.bf16 %v1082_v13, %v1081_v12  ;;  %1524 = vst [vmem:[%s1907_s30] sm:$0xff] %v1523_v16   ;;  %v1084_v28 = vmax.f32 %v1052_v19, 0.0  ;;  %v1055_v29 = vadd.f32 %v1996_v51, %v1019_v14  ;;  %v1056_v30 = vadd.f32 %v1996_v51, %v1020_v15  ;;  %v1029_v48 = vld [vmem:[#allocation2 + $0x70] sm:$0xff]  ;;  %v1030_v49 = vld [vmem:[#allocation2 + $0xc0] sm:$0xff]  ;;  %v1031_v55 = vld [vmem:[#allocation2 + $0xa8] sm:$0xff] }
 0x194   : > { %1600 = vst [vmem:[%s1907_s30 + $0x8] sm:$0xff] %v1528_v17   ;;  %v1085_v32 = vmax.f32 %v1053_v24, 0.0  ;;  %v1086_v33 = vmax.f32 %v1054_v25, 0.0  ;;  %v1057_v34 = vadd.f32 %v1996_v51, %v1021_v20  ;;  %v1058_v35 = vadd.f32 %v1996_v51, %v1022_v21  ;;  %v1032_v60 = vld [vmem:[#allocation2 + $0xd0] sm:$0xff]  ;;  %v1034_v2 = vld [vmem:[#allocation2 + $0x28] sm:$0xff]  ;;  %v1035_v7 = vld [vmem:[#allocation2 + $0xa0] sm:$0xff] }
 0x195   : > { %1601 = vst [vmem:[%s1907_s30 + $0x10] sm:$0xff] %v1533_v22   ;;  %v1543_v38 = vpack.c.bf16 %v1084_v28, %v1083_v27  ;;  %v1087_v39 = vmax.f32 %v1055_v29, 0.0  ;;  %v1088_v40 = vmax.f32 %v1056_v30, 0.0  ;;  %v1059_v41 = vadd.f32 %v1996_v51, %v1023_v26  ;;  %v1033_v1 = vld [vmem:[#allocation2 + $0x10] sm:$0xff]  ;;  %v1036_v8 = vld [vmem:[#allocation2 + $0xf8] sm:$0xff]  ;;  %v1037_v13 = vld [vmem:[#allocation2 + $0x20] sm:$0xff] }
 0x196   : > { %1602 = vst [vmem:[%s1907_s30 + $0x18] sm:$0xff] %v1538_v23   ;;  %v1548_v44 = vpack.c.bf16 %v1086_v33, %v1085_v32  ;;  %v1089_v45 = vmax.f32 %v1057_v34, 0.0  ;;  %v1090_v46 = vmax.f32 %v1058_v35, 0.0  ;;  %v1060_v47 = vadd.f32 %v1996_v51, %v1024_v31  ;;  %v1038_v14 = vld [vmem:[#allocation2 + $0x98] sm:$0xff] }
 0x197   : > { %1603 = vst [vmem:[%s1907_s30 + $0x20] sm:$0xff] %v1543_v38   ;;  %v1553_v50 = vpack.c.bf16 %v1088_v40, %v1087_v39  ;;  %v1091_v52 = vmax.f32 %v1059_v41, 0.0  ;;  %v1061_v53 = vadd.f32 %v1996_v51, %v1025_v36  ;;  %v1062_v54 = vadd.f32 %v1996_v51, %v1026_v37 }
 0x198   : > { %1604 = vst [vmem:[%s1907_s30 + $0x28] sm:$0xff] %v1548_v44   ;;  %v1558_v56 = vpack.c.bf16 %v1090_v46, %v1089_v45  ;;  %v1092_v57 = vmax.f32 %v1060_v47, 0.0  ;;  %v1063_v58 = vadd.f32 %v1996_v51, %v1027_v42  ;;  %v1064_v59 = vadd.f32 %v1996_v51, %v1028_v43 }
 0x199   : > { %1605 = vst [vmem:[%s1907_s30 + $0x30] sm:$0xff] %v1553_v50   ;;  %v1093_v61 = vmax.f32 %v1061_v53, 0.0  ;;  %v1094_v62 = vmax.f32 %v1062_v54, 0.0  ;;  %v1065_v63 = vadd.f32 %v1996_v51, %v1029_v48  ;;  %v1066_v0 = vadd.f32 %v1996_v51, %v1030_v49 }
 0x19a   : > { %1606 = vst [vmem:[%s1907_s30 + $0x38] sm:$0xff] %v1558_v56   ;;  %v1563_v3 = vpack.c.bf16 %v1092_v57, %v1091_v52  ;;  %v1095_v4 = vmax.f32 %v1063_v58, 0.0  ;;  %v1096_v5 = vmax.f32 %v1064_v59, 0.0  ;;  %v1067_v6 = vadd.f32 %v1996_v51, %v1031_v55 }
 0x19b   : > { %v1568_v9 = vpack.c.bf16 %v1094_v62, %v1093_v61  ;;  %v1097_v10 = vmax.f32 %v1065_v63, 0.0  ;;  %v1098_v11 = vmax.f32 %v1066_v0, 0.0  ;;  %v1068_v12 = vadd.f32 %v1996_v51, %v1032_v60 }
 0x19c   : > { %1607 = vst [vmem:[%s1907_s30 + $0x40] sm:$0xff] %v1563_v3   ;;  %v1573_v15 = vpack.c.bf16 %v1096_v5, %v1095_v4  ;;  %v1099_v16 = vmax.f32 %v1067_v6, 0.0  ;;  %v1069_v17 = vadd.f32 %v1996_v51, %v1033_v1  ;;  %v1070_v18 = vadd.f32 %v1996_v51, %v1034_v2 }
 0x19d   : > { %1608 = vst [vmem:[%s1907_s30 + $0x48] sm:$0xff] %v1568_v9   ;;  %v1578_v19 = vpack.c.bf16 %v1098_v11, %v1097_v10  ;;  %v1100_v20 = vmax.f32 %v1068_v12, 0.0  ;;  %v1071_v21 = vadd.f32 %v1996_v51, %v1035_v7  ;;  %v1072_v22 = vadd.f32 %v1996_v51, %v1036_v8 }
 0x19e   : > { %1609 = vst [vmem:[%s1907_s30 + $0x50] sm:$0xff] %v1573_v15   ;;  %v1101_v23 = vmax.f32 %v1069_v17, 0.0  ;;  %v1102_v24 = vmax.f32 %v1070_v18, 0.0  ;;  %v1073_v25 = vadd.f32 %v1996_v51, %v1037_v13  ;;  %v1074_v26 = vadd.f32 %v1996_v51, %v1038_v14 }
 0x19f   : > { %1610 = vst [vmem:[%s1907_s30 + $0x58] sm:$0xff] %v1578_v19   ;;  %v1583_v27 = vpack.c.bf16 %v1100_v20, %v1099_v16  ;;  %v1103_v28 = vmax.f32 %v1071_v21, 0.0  ;;  %v1104_v29 = vmax.f32 %v1072_v22, 0.0 }
 0x1a0   : > { %v1588_v30 = vpack.c.bf16 %v1102_v24, %v1101_v23  ;;  %v1105_v31 = vmax.f32 %v1073_v25, 0.0  ;;  %v1106_v32 = vmax.f32 %v1074_v26, 0.0 }
 0x1a1   : > { %1611 = vst [vmem:[%s1907_s30 + $0x60] sm:$0xff] %v1583_v27   ;;  %v1593_v33 = vpack.c.bf16 %v1104_v29, %v1103_v28 }
 0x1a2   : > { %1612 = vst [vmem:[%s1907_s30 + $0x68] sm:$0xff] %v1588_v30   ;;  %v1598_v34 = vpack.c.bf16 %v1106_v32, %v1105_v31 }
 0x1a3   : > { %1613 = vst [vmem:[%s1907_s30 + $0x70] sm:$0xff] %v1593_v33  }
 0x1a4   : > { %1614 = vst [vmem:[%s1907_s30 + $0x78] sm:$0xff] %v1598_v34  }
 0x1a5 PF: > { %s13_s18 = sadd.s32 1, %s1743_s18   ;;  %s2071_s12 = smov %s1723_s13 }
 0x1a6   : > { %p10_p0 = scmp.ge.s32.totalorder %s13_s18, 6   ;;  %s2072_s13 = smov %s1817_s25 }
 0x1a7   : > { %s2073_s14 = smov %s1735_s16  ;;  %s2074_s15 = smov %s1739_s17 }
 0x1a8   : > { %s2075_s16 = smov %s2078_s19  ;;  %s2076_s17 = smov %s2082_s20 }
 0x1a9   :  { %12 = sbr.rel (!%p10_p0) target bundleno = 4 (0x4), region = 116 }

// kernel: attribute_decoder_forward.3
= control target key start
LH: loop header
LB: loop body
LE: loop exit
PB: predicated region body
PF: predicated region fallthrough
CT: control target
= control target key end

     0   :  { %s1639_s12 = smov 0   ;;  %s1641_s13 = smov 0   ;;  %s1956_s0 = inlined_call_operand.vmem [shape: bf16[512,512], index: 0, kind: input, shape index: {}]   ;;  %s1957_s1 = inlined_call_operand.vmem [shape: bf16[512,128], index: 1, kind: input, shape index: {}]   ;;  %s1958_s2 = inlined_call_operand.vmem [shape: f32[1,128], index: 2, kind: input, shape index: {}]   ;;  %s1959_s3 = inlined_call_operand.vmem [shape: f32[512,128], index: 3, kind: output, shape index: {}]  }
   0x1   :  { %s1643_s14 = smov 0   ;;  %s1645_s15 = smov 0  }
   0x2   :  { %s1647_s16 = smov 0   ;;  %s1649_s17 = smov 0  }
   0x3   :  { %s1651_s18 = smov 0  }
   0x4 LB: > { %s22_s19 = sadd.s32 1, %s1608_s16  ;;  %s25_s20 = sadd.s32 1, %s1612_s17  ;;  %s1616_s18 = sphi %s1651_s18, %s13_s18   ;;  %s1612_s17 = sphi %s1649_s17, %s1965_s17   ;;  %s1608_s16 = sphi %s1647_s16, %s1964_s16   ;;  %s1604_s15 = sphi %s1645_s15, %s1963_s15   ;;  %s1600_s14 = sphi %s1643_s14, %s1962_s14   ;;  %s1596_s13 = sphi %s1641_s13, %s1961_s13   ;;  %s1592_s12 = sphi %s1639_s12, %s1960_s12  }
   0x5   : > { %p23_p0 = scmp.ge.s32.totalorder %s22_s19, 2  ;;  %p41_p1 = scmp.ne.s32.totalorder %s1596_s13, %s1592_s12 }
   0x6   : > { %p42_p2 = scmp.eq.s32.totalorder %s1616_s18, 0  ;;  %s34_s24 = sadd.s32 1, %s1596_s13 }
   0x7   : > { %s1967_s19 = smov (%p23_p0, %s22_s19), 0  ;;  %s1969_s20 = smov (!%p23_p0, %s25_s20), %s1612_s17 }
   0x8   : > { %p43_p3 = por %p42_p2, %p41_p1  ;;  %p27_p4 = scmp.ge.s32.totalorder %s1969_s20, 2 }
   0x9   : > { %s30_s21 = ssub.s32 %s1608_s16, %s1967_s19  ;;  %p1231_p6 = scmp.ge.s32.totalorder %s1616_s18, 4 }
   0xa   : > { %s1971_s20 = smov (%p27_p4, %s1969_s20), 0 }
   0xb   : > { %s29_s22 = ssub.s32 %s1612_s17, %s1971_s20  ;;  %143 = sbr.rel (%p1231_p6) target bundleno = 55 (0x37), region = 20 }
   0xc   : > { %s31_s23 = sor.u32 %s30_s21, %s29_s22 }
   0xd   : > { %p32_p5 = scmp.eq.s32.totalorder %s31_s23, 0 }
   0xf   : > { %s1690_s25 = scalar_select %p32_p5, %s1596_s13, %s34_s24  }
  0x10   : > { %146 = sbr.rel (!%p43_p3) target bundleno = 55 (0x37), region = 24  ;;  %s148_s26 = sand.u32 (%p43_p3), 1, %s1596_s13  }
  0x11   : > { %s1234_s27 = sshll.u32 (%p43_p3), %s1608_s16, 1  ;;  %s1232_s28 = sshll.u32 (%p43_p3), %s148_s26, 8 }
  0x12   : > { %s1439_s29 = sshll.u32 (%p43_p3), %s1612_s17, 7  ;;  %s1704_s8 = scalar_lea.vmem (%p43_p3), [#allocation3], %s1232_s28 }
  0x13   : > { %s154_s30 = sadd.s32 (%p43_p3), %s1439_s29, %s1234_s27 }
  0x14   : > { %s1236_s4 = sshll.u32 (%p43_p3), %s154_s30, 2 }
  0x15   : > { %s1699_s7 = scalar_lea.vmem %s1956_s0, %s1236_s4 }
  0x16   : > { %v247_v0 = vld [vmem:[%s1699_s7] sm:$0xff]  ;;  %v249_v1 = vld [vmem:[%s1699_s7 + $0x10] sm:$0xff] }
  0x17   : > { %v251_v2 = vld [vmem:[%s1699_s7 + $0x20] sm:$0xff]  ;;  %248 = vst [vmem:[%s1704_s8] sm:$0xff] %v247_v0  ;;  %v253_v3 = vld [vmem:[%s1699_s7 + $0x30] sm:$0xff] }
  0x18   : > { %250 = vst [vmem:[%s1704_s8 + $0x8] sm:$0xff] %v249_v1  ;;  %v255_v4 = vld [vmem:[%s1699_s7 + $0x40] sm:$0xff]  ;;  %v257_v5 = vld [vmem:[%s1699_s7 + $0x50] sm:$0xff] }
  0x19   : > { %252 = vst [vmem:[%s1704_s8 + $0x10] sm:$0xff] %v251_v2  ;;  %v259_v6 = vld [vmem:[%s1699_s7 + $0x60] sm:$0xff]  ;;  %v261_v7 = vld [vmem:[%s1699_s7 + $0x70] sm:$0xff] }
  0x1a   : > { %254 = vst [vmem:[%s1704_s8 + $0x18] sm:$0xff] %v253_v3  ;;  %v263_v8 = vld [vmem:[%s1699_s7 + $0x80] sm:$0xff]  ;;  %v265_v9 = vld [vmem:[%s1699_s7 + $0x90] sm:$0xff] }
  0x1b   : > { %256 = vst [vmem:[%s1704_s8 + $0x20] sm:$0xff] %v255_v4  ;;  %v267_v10 = vld [vmem:[%s1699_s7 + $0xa0] sm:$0xff]  ;;  %v269_v11 = vld [vmem:[%s1699_s7 + $0xb0] sm:$0xff] }
  0x1c   : > { %258 = vst [vmem:[%s1704_s8 + $0x28] sm:$0xff] %v257_v5  ;;  %v271_v12 = vld [vmem:[%s1699_s7 + $0xc0] sm:$0xff]  ;;  %v273_v13 = vld [vmem:[%s1699_s7 + $0xd0] sm:$0xff] }
  0x1d   : > { %260 = vst [vmem:[%s1704_s8 + $0x30] sm:$0xff] %v259_v6  ;;  %v275_v14 = vld [vmem:[%s1699_s7 + $0xe0] sm:$0xff]  ;;  %v277_v15 = vld [vmem:[%s1699_s7 + $0xf0] sm:$0xff] }
  0x1e   : > { %262 = vst [vmem:[%s1704_s8 + $0x38] sm:$0xff] %v261_v7  ;;  %v279_v16 = vld [vmem:[%s1699_s7 + $0x100] sm:$0xff]  ;;  %v281_v17 = vld [vmem:[%s1699_s7 + $0x110] sm:$0xff] }
  0x1f   : > { %264 = vst [vmem:[%s1704_s8 + $0x40] sm:$0xff] %v263_v8  ;;  %v283_v18 = vld [vmem:[%s1699_s7 + $0x120] sm:$0xff]  ;;  %v285_v19 = vld [vmem:[%s1699_s7 + $0x130] sm:$0xff] }
  0x20   : > { %266 = vst [vmem:[%s1704_s8 + $0x48] sm:$0xff] %v265_v9  ;;  %v287_v20 = vld [vmem:[%s1699_s7 + $0x140] sm:$0xff]  ;;  %v289_v21 = vld [vmem:[%s1699_s7 + $0x150] sm:$0xff] }
  0x21   : > { %268 = vst [vmem:[%s1704_s8 + $0x50] sm:$0xff] %v267_v10  ;;  %v291_v22 = vld [vmem:[%s1699_s7 + $0x160] sm:$0xff]  ;;  %v293_v23 = vld [vmem:[%s1699_s7 + $0x170] sm:$0xff] }
  0x22   : > { %270 = vst [vmem:[%s1704_s8 + $0x58] sm:$0xff] %v269_v11  ;;  %v295_v24 = vld [vmem:[%s1699_s7 + $0x180] sm:$0xff]  ;;  %v297_v25 = vld [vmem:[%s1699_s7 + $0x190] sm:$0xff] }
  0x23   : > { %272 = vst [vmem:[%s1704_s8 + $0x60] sm:$0xff] %v271_v12  ;;  %v299_v26 = vld [vmem:[%s1699_s7 + $0x1a0] sm:$0xff]  ;;  %v301_v27 = vld [vmem:[%s1699_s7 + $0x1b0] sm:$0xff] }
  0x24   : > { %274 = vst [vmem:[%s1704_s8 + $0x68] sm:$0xff] %v273_v13  ;;  %v303_v28 = vld [vmem:[%s1699_s7 + $0x1c0] sm:$0xff]  ;;  %v305_v29 = vld [vmem:[%s1699_s7 + $0x1d0] sm:$0xff] }
  0x25   : > { %276 = vst [vmem:[%s1704_s8 + $0x70] sm:$0xff] %v275_v14  ;;  %v307_v30 = vld [vmem:[%s1699_s7 + $0x1e0] sm:$0xff]  ;;  %v309_v31 = vld [vmem:[%s1699_s7 + $0x1f0] sm:$0xff] }
  0x26   : > { %278 = vst [vmem:[%s1704_s8 + $0x78] sm:$0xff] %v277_v15 }
  0x27   : > { %280 = vst [vmem:[%s1704_s8 + $0x80] sm:$0xff] %v279_v16 }
  0x28   : > { %282 = vst [vmem:[%s1704_s8 + $0x88] sm:$0xff] %v281_v17 }
  0x29   : > { %284 = vst [vmem:[%s1704_s8 + $0x90] sm:$0xff] %v283_v18 }
  0x2a   : > { %286 = vst [vmem:[%s1704_s8 + $0x98] sm:$0xff] %v285_v19 }
  0x2b   : > { %288 = vst [vmem:[%s1704_s8 + $0xa0] sm:$0xff] %v287_v20 }
  0x2c   : > { %290 = vst [vmem:[%s1704_s8 + $0xa8] sm:$0xff] %v289_v21 }
  0x2d   : > { %292 = vst [vmem:[%s1704_s8 + $0xb0] sm:$0xff] %v291_v22 }
  0x2e   : > { %294 = vst [vmem:[%s1704_s8 + $0xb8] sm:$0xff] %v293_v23 }
  0x2f   : > { %296 = vst [vmem:[%s1704_s8 + $0xc0] sm:$0xff] %v295_v24 }
  0x30   : > { %298 = vst [vmem:[%s1704_s8 + $0xc8] sm:$0xff] %v297_v25 }
  0x31   : > { %300 = vst [vmem:[%s1704_s8 + $0xd0] sm:$0xff] %v299_v26 }
  0x32   : > { %302 = vst [vmem:[%s1704_s8 + $0xd8] sm:$0xff] %v301_v27 }
  0x33   : > { %304 = vst [vmem:[%s1704_s8 + $0xe0] sm:$0xff] %v303_v28 }
  0x34   : > { %306 = vst [vmem:[%s1704_s8 + $0xe8] sm:$0xff] %v305_v29 }
  0x35   : > { %308 = vst [vmem:[%s1704_s8 + $0xf0] sm:$0xff] %v307_v30 }
  0x36   : > { %310 = vst [vmem:[%s1704_s8 + $0xf8] sm:$0xff] %v309_v31 }
  0x37 PF: > { %p1237_p7 = scmp.ge.s32.totalorder %s1616_s18, 1  ;;  %p324_p8 = scmp.lt.s32.totalorder %s1616_s18, 5 }
  0x39   : > { %p325_p9 = pnand %p1237_p7, %p324_p8 }
  0x3a   : > { %s331_s9 = sand.u32 (!%p325_p9), 1, %s1592_s12   ;;  %s1239_s10 = sshll.u32 (!%p325_p9), %s1600_s14, 5 }
  0x3b   : > { %328 = sbr.rel (%p325_p9) target bundleno = 432 (0x1b0), region = 66  ;;  %s1238_s11 = sshll.u32 (!%p325_p9), %s331_s9, 8 }
  0x3c   : > { %p362_p10 = scmp.lt.s32.totalorder (!%p325_p9), %s1239_s10, 63  ;;  %s1241_s21 = sshll.u32 (!%p325_p9), %s1604_s15, 5 }
  0x3d   : > { %p368_p11 = scmp.lt.s32.totalorder (!%p325_p9), %s1241_s21, 63  ;;  %s1782_s12 = scalar_lea.vmem (!%p325_p9), [#allocation3], %s1238_s11 }
  0x3e   : > { %p1243_p12 = scmp.ne.s32.totalorder (!%p325_p9), %s1600_s14, 0 }
  0x40   : > { %s1973_s10 = smov (!%p362_p10, %s1239_s10), 63  ;;  %s1975_s21 = smov (!%p368_p11, %s1241_s21), 63 }
  0x41   : > { %s1240_s22 = sshll.u32 %s1973_s10, 2  ;;  %s1242_s27 = sshll.u32 %s1975_s21, 3 }
  0x42   : > { %s1775_s26 = scalar_lea.vmem %s1957_s1, %s1240_s22  ;;  %s1780_s30 = scalar_lea.vmem %s1959_s3, %s1242_s27 }
  0x43   : > { %376 = sbr.rel (%p1243_p12) target bundleno = 105 (0x69), region = 74 }
  0x48   : > { %v1618_v32 = vmov 0.0  }
  0x49   : > { %377 = vst [vmem:[#allocation2 + $0xb0] sm:$0xff] %v1618_v32 }
  0x4a   : > { %378 = vst [vmem:[#allocation2] sm:$0xff] %v1618_v32 }
  0x4b   : > { %379 = vst [vmem:[#allocation2 + $0xd8] sm:$0xff] %v1618_v32 }
  0x4c   : > { %380 = vst [vmem:[#allocation2 + $0x18] sm:$0xff] %v1618_v32 }
  0x4d   : > { %381 = vst [vmem:[#allocation2 + $0x50] sm:$0xff] %v1618_v32 }
  0x4e   : > { %382 = vst [vmem:[#allocation2 + $0x68] sm:$0xff] %v1618_v32 }
  0x4f   : > { %383 = vst [vmem:[#allocation2 + $0x30] sm:$0xff] %v1618_v32 }
  0x50   : > { %384 = vst [vmem:[#allocation2 + $0x48] sm:$0xff] %v1618_v32 }
  0x51   : > { %385 = vst [vmem:[#allocation2 + $0x80] sm:$0xff] %v1618_v32 }
  0x52   : > { %386 = vst [vmem:[#allocation2 + $0x88] sm:$0xff] %v1618_v32 }
  0x53   : > { %387 = vst [vmem:[#allocation2 + $0xe8] sm:$0xff] %v1618_v32 }
  0x54   : > { %388 = vst [vmem:[#allocation2 + $0xb8] sm:$0xff] %v1618_v32 }
  0x55   : > { %389 = vst [vmem:[#allocation2 + $0x60] sm:$0xff] %v1618_v32 }
  0x56   : > { %390 = vst [vmem:[#allocation2 + $0xf0] sm:$0xff] %v1618_v32 }
  0x57   : > { %391 = vst [vmem:[#allocation2 + $0x8] sm:$0xff] %v1618_v32 }
  0x58   : > { %392 = vst [vmem:[#allocation2 + $0x78] sm:$0xff] %v1618_v32 }
  0x59   : > { %393 = vst [vmem:[#allocation2 + $0x38] sm:$0xff] %v1618_v32 }
  0x5a   : > { %394 = vst [vmem:[#allocation2 + $0x58] sm:$0xff] %v1618_v32 }
  0x5b   : > { %395 = vst [vmem:[#allocation2 + $0x40] sm:$0xff] %v1618_v32 }
  0x5c   : > { %396 = vst [vmem:[#allocation2 + $0xc8] sm:$0xff] %v1618_v32 }
  0x5d   : > { %397 = vst [vmem:[#allocation2 + $0xe0] sm:$0xff] %v1618_v32 }
  0x5e   : > { %398 = vst [vmem:[#allocation2 + $0x90] sm:$0xff] %v1618_v32 }
  0x5f   : > { %399 = vst [vmem:[#allocation2 + $0x70] sm:$0xff] %v1618_v32 }
  0x60   : > { %400 = vst [vmem:[#allocation2 + $0xc0] sm:$0xff] %v1618_v32 }
  0x61   : > { %401 = vst [vmem:[#allocation2 + $0xa8] sm:$0xff] %v1618_v32 }
  0x62   : > { %402 = vst [vmem:[#allocation2 + $0xd0] sm:$0xff] %v1618_v32 }
  0x63   : > { %403 = vst [vmem:[#allocation2 + $0x10] sm:$0xff] %v1618_v32 }
  0x64   : > { %404 = vst [vmem:[#allocation2 + $0x28] sm:$0xff] %v1618_v32 }
  0x65   : > { %405 = vst [vmem:[#allocation2 + $0xa0] sm:$0xff] %v1618_v32 }
  0x66   : > { %406 = vst [vmem:[#allocation2 + $0xf8] sm:$0xff] %v1618_v32 }
  0x67   : > { %407 = vst [vmem:[#allocation2 + $0x20] sm:$0xff] %v1618_v32 }
  0x68   : > { %408 = vst [vmem:[#allocation2 + $0x98] sm:$0xff] %v1618_v32 }
  0x69 PF: > { %v1479_v33 = vld [vmem:[%s1775_s26 + $0x38] sm:$0xff]  ;;  %v1478_v35 = vld [vmem:[%s1775_s26 + $0x30] sm:$0xff]  ;;  %v1477_v37 = vld [vmem:[%s1775_s26 + $0x28] sm:$0xff]  ;;  %p1436_p13 = scmp.ne.s32.totalorder %s1600_s14, 1 }
  0x6a   : > { %v1487_v34 = vld [vmem:[%s1775_s26 + $0x78] sm:$0xff]  ;;  %761 = vmatpush.bf16.msra.mxu0 %v1479_v33  ;;  %1488 = vmatpush.bf16.msra.mxu2 %v1479_v33  ;;  %v1486_v36 = vld [vmem:[%s1775_s26 + $0x70] sm:$0xff]  ;;  %v1485_v38 = vld [vmem:[%s1775_s26 + $0x68] sm:$0xff] }
  0x6b   : > { %850 = vmatpush.bf16.msra.mxu1 %v1487_v34  ;;  %1496 = vmatpush.bf16.msra.mxu3 %v1487_v34  ;;  %v1476_v39 = vld [vmem:[%s1775_s26 + $0x20] sm:$0xff]  ;;  %v1475_v41 = vld [vmem:[%s1775_s26 + $0x18] sm:$0xff]  ;;  %v1474_v43 = vld [vmem:[%s1775_s26 + $0x10] sm:$0xff] }
  0x6c   : > { %v1484_v40 = vld [vmem:[%s1775_s26 + $0x60] sm:$0xff]  ;;  %v1483_v42 = vld [vmem:[%s1775_s26 + $0x58] sm:$0xff]  ;;  %v1482_v44 = vld [vmem:[%s1775_s26 + $0x50] sm:$0xff] }
  0x6d   : > { %v1473_v45 = vld [vmem:[%s1775_s26 + $0x8] sm:$0xff]  ;;  %v1472_v47 = vld [vmem:[%s1775_s26] sm:$0xff]  ;;  %v1254_v61 = vld [vmem:[%s1782_s12 + $0x10] sm:$0xf] }
  0x6e   : > { %762 = vmatpush.bf16.msra.mxu0 %v1478_v35  ;;  %1489 = vmatpush.bf16.msra.mxu2 %v1478_v35  ;;  %v1481_v46 = vld [vmem:[%s1775_s26 + $0x48] sm:$0xff]  ;;  %v1480_v48 = vld [vmem:[%s1775_s26 + $0x40] sm:$0xff]  ;;  %v1443_v62 = vld [vmem:[%s1782_s12 + $0x14] sm:$0xf0] }
  0x6f   : > { %851 = vmatpush.bf16.msra.mxu1 %v1486_v36  ;;  %1497 = vmatpush.bf16.msra.mxu3 %v1486_v36  ;;  %v1246_v49 = vld [vmem:[%s1782_s12] sm:$0xf]  ;;  %v1441_v50 = vld [vmem:[%s1782_s12 + $0x4] sm:$0xf0]  ;;  %v1440_v53 = vld [vmem:[%s1782_s12 + $0x4] sm:$0xf]  ;;  %v1255_v5 = vor.u32 %v1443_v62, %v1254_v61 }
  0x70   : > { %v1310_v51 = vld [vmem:[%s1782_s12 + $0x80] sm:$0xf]  ;;  %v1457_v52 = vld [vmem:[%s1782_s12 + $0x84] sm:$0xf0]  ;;  %v1248_v54 = vld [vmem:[%s1782_s12 + $0x8] sm:$0xf0]  ;;  %v1247_v57 = vor.u32 %v1441_v50, %v1246_v49 }
  0x71   : > { %v1456_v55 = vld [vmem:[%s1782_s12 + $0x84] sm:$0xf]  ;;  %v1312_v56 = vld [vmem:[%s1782_s12 + $0x88] sm:$0xf0]  ;;  %v1311_v58 = vor.u32 %v1457_v52, %v1310_v51  ;;  %v1251_v59 = vor.u32 %v1440_v53, %v1248_v54  ;;  %v1318_v63 = vld [vmem:[%s1782_s12 + $0x90] sm:$0xf] }
  0x72   : > { %763 = vmatpush.bf16.msra.mxu0 %v1477_v37  ;;  %1490 = vmatpush.bf16.msra.mxu2 %v1477_v37  ;;  %v1315_v60 = vor.u32 %v1456_v55, %v1312_v56  ;;  %v1459_v0 = vld [vmem:[%s1782_s12 + $0x94] sm:$0xf0]  ;;  %v1442_v1 = vld [vmem:[%s1782_s12 + $0x14] sm:$0xf]  ;;  %v1256_v2 = vld [vmem:[%s1782_s12 + $0x18] sm:$0xf0] }
  0x73   : > { %852 = vmatpush.bf16.msra.mxu1 %v1485_v38  ;;  %1498 = vmatpush.bf16.msra.mxu3 %v1485_v38  ;;  %v1458_v3 = vld [vmem:[%s1782_s12 + $0x94] sm:$0xf]  ;;  %v1320_v4 = vld [vmem:[%s1782_s12 + $0x98] sm:$0xf0]  ;;  %v1319_v6 = vor.u32 %v1459_v0, %v1318_v63  ;;  %v1259_v7 = vor.u32 %v1442_v1, %v1256_v2  ;;  %v1262_v9 = vld [vmem:[%s1782_s12 + $0x20] sm:$0xf] }
  0x74   : > { %v1323_v8 = vor.u32 %v1458_v3, %v1320_v4  ;;  %v1445_v10 = vld [vmem:[%s1782_s12 + $0x24] sm:$0xf0]  ;;  %v1326_v11 = vld [vmem:[%s1782_s12 + $0xa0] sm:$0xf]  ;;  %v1444_v13 = vld [vmem:[%s1782_s12 + $0x24] sm:$0xf] }
  0x75   : > { %v1461_v12 = vld [vmem:[%s1782_s12 + $0xa4] sm:$0xf0]  ;;  %v1264_v14 = vld [vmem:[%s1782_s12 + $0x28] sm:$0xf0]  ;;  %v1460_v15 = vld [vmem:[%s1782_s12 + $0xa4] sm:$0xf]  ;;  %v1263_v17 = vor.u32 %v1445_v10, %v1262_v9 }
  0x76   : > { %764 = vmatpush.bf16.msra.mxu0 %v1476_v39  ;;  %1491 = vmatpush.bf16.msra.mxu2 %v1476_v39  ;;  %v1328_v16 = vld [vmem:[%s1782_s12 + $0xa8] sm:$0xf0]  ;;  %v1327_v18 = vor.u32 %v1461_v12, %v1326_v11  ;;  %v1267_v19 = vor.u32 %v1444_v13, %v1264_v14  ;;  %v1270_v21 = vld [vmem:[%s1782_s12 + $0x30] sm:$0xf]  ;;  %v1447_v22 = vld [vmem:[%s1782_s12 + $0x34] sm:$0xf0] }
  0x77   : > { %853 = vmatpush.bf16.msra.mxu1 %v1484_v40  ;;  %1499 = vmatpush.bf16.msra.mxu3 %v1484_v40  ;;  %v1331_v20 = vor.u32 %v1460_v15, %v1328_v16  ;;  %v1334_v23 = vld [vmem:[%s1782_s12 + $0xb0] sm:$0xf]  ;;  %v1463_v24 = vld [vmem:[%s1782_s12 + $0xb4] sm:$0xf0]  ;;  %v1446_v25 = vld [vmem:[%s1782_s12 + $0x34] sm:$0xf]  ;;  %v1271_v29 = vor.u32 %v1447_v22, %v1270_v21 }
  0x78   : > { %v1272_v26 = vld [vmem:[%s1782_s12 + $0x38] sm:$0xf0]  ;;  %v1462_v27 = vld [vmem:[%s1782_s12 + $0xb4] sm:$0xf]  ;;  %v1335_v30 = vor.u32 %v1463_v24, %v1334_v23  ;;  %v1278_v33 = vld [vmem:[%s1782_s12 + $0x40] sm:$0xf] }
  0x79   : > { %v1336_v28 = vld [vmem:[%s1782_s12 + $0xb8] sm:$0xf0]  ;;  %v1275_v31 = vor.u32 %v1446_v25, %v1272_v26  ;;  %v1449_v34 = vld [vmem:[%s1782_s12 + $0x44] sm:$0xf0]  ;;  %v1342_v35 = vld [vmem:[%s1782_s12 + $0xc0] sm:$0xf] }
  0x7a   : > { %765 = vmatpush.bf16.msra.mxu0 %v1475_v41  ;;  %1492 = vmatpush.bf16.msra.mxu2 %v1475_v41  ;;  %v1339_v32 = vor.u32 %v1462_v27, %v1336_v28  ;;  %v1465_v36 = vld [vmem:[%s1782_s12 + $0xc4] sm:$0xf0]  ;;  %v1448_v37 = vld [vmem:[%s1782_s12 + $0x44] sm:$0xf]  ;;  %v1280_v38 = vld [vmem:[%s1782_s12 + $0x48] sm:$0xf0]  ;;  %v1279_v41 = vor.u32 %v1449_v34, %v1278_v33 }
  0x7b   : > { %854 = vmatpush.bf16.msra.mxu1 %v1483_v42  ;;  %1500 = vmatpush.bf16.msra.mxu3 %v1483_v42  ;;  %v1464_v39 = vld [vmem:[%s1782_s12 + $0xc4] sm:$0xf]  ;;  %v1344_v40 = vld [vmem:[%s1782_s12 + $0xc8] sm:$0xf0]  ;;  %v1343_v42 = vor.u32 %v1465_v36, %v1342_v35  ;;  %v1450_v49 = vld [vmem:[%s1782_s12 + $0x54] sm:$0xf] }
  0x7c   : > { %v1288_v50 = vld [vmem:[%s1782_s12 + $0x58] sm:$0xf0]  ;;  %v1466_v51 = vld [vmem:[%s1782_s12 + $0xd4] sm:$0xf]  ;;  %v1452_v61 = vld [vmem:[%s1782_s12 + $0x64] sm:$0xf] }
  0x7d   : > { %v1352_v52 = vld [vmem:[%s1782_s12 + $0xd8] sm:$0xf0]  ;;  %v1291_v55 = vor.u32 %v1450_v49, %v1288_v50  ;;  %v1296_v62 = vld [vmem:[%s1782_s12 + $0x68] sm:$0xf0]  ;;  %v1468_v63 = vld [vmem:[%s1782_s12 + $0xe4] sm:$0xf] }
  0x7e   : > { %766 = vmatpush.bf16.msra.mxu0 %v1474_v43  ;;  %1493 = vmatpush.bf16.msra.mxu2 %v1474_v43  ;;  %v1283_v43 = vor.u32 %v1448_v37, %v1280_v38  ;;  %v1355_v56 = vor.u32 %v1466_v51, %v1352_v52  ;;  %v1360_v0 = vld [vmem:[%s1782_s12 + $0xe8] sm:$0xf0]  ;;  %v1299_v3 = vor.u32 %v1452_v61, %v1296_v62  ;;  %v1454_v9 = vld [vmem:[%s1782_s12 + $0x74] sm:$0xf]  ;;  %v1304_v10 = vld [vmem:[%s1782_s12 + $0x78] sm:$0xf0] }
  0x7f   : > { %855 = vmatpush.bf16.msra.mxu1 %v1482_v44  ;;  %1501 = vmatpush.bf16.msra.mxu3 %v1482_v44  ;;  %v1347_v44 = vor.u32 %v1464_v39, %v1344_v40  ;;  %v1363_v4 = vor.u32 %v1468_v63, %v1360_v0  ;;  %v1470_v11 = vld [vmem:[%s1782_s12 + $0xf4] sm:$0xf]  ;;  %v1368_v12 = vld [vmem:[%s1782_s12 + $0xf8] sm:$0xf0]  ;;  %v1307_v15 = vor.u32 %v1454_v9, %v1304_v10  ;;  %v410_v27 = vld [vmem:[#allocation2] sm:$0xff] }
  0x80   : > { %v1371_v16 = vor.u32 %v1470_v11, %v1368_v12  ;;  %v425_v23 = vld [vmem:[#allocation2 + $0x38] sm:$0xff]  ;;  %v429_v63 = vld [vmem:[#allocation2 + $0xe0] sm:$0xff]  ;;  %v430_v9 = vld [vmem:[#allocation2 + $0x90] sm:$0xff] }
  0x81   : > { %v426_v33 = vld [vmem:[#allocation2 + $0x58] sm:$0xff] }
  0x82   : > { %767 = vmatpush.bf16.msra.mxu0 %v1473_v45  ;;  %1494 = vmatpush.bf16.msra.mxu2 %v1473_v45  ;;  %v1286_v45 = vld [vmem:[%s1782_s12 + $0x50] sm:$0xf]  ;;  %v411_v37 = vld [vmem:[#allocation2 + $0xd8] sm:$0xff] }
  0x83   : > { %856 = vmatpush.bf16.msra.mxu1 %v1481_v46  ;;  %1502 = vmatpush.bf16.msra.mxu3 %v1481_v46  ;;  %v1451_v46 = vld [vmem:[%s1782_s12 + $0x54] sm:$0xf0] }
  0x84   : > { %v1287_v53 = vor.u32 %v1451_v46, %v1286_v45 }
  0x86   : > { %768 = vmatpush.bf16.msra.mxu0 %v1472_v47  ;;  %1495 = vmatpush.bf16.msra.mxu2 %v1472_v47  ;;  %v1350_v47 = vld [vmem:[%s1782_s12 + $0xd0] sm:$0xf] }
  0x87   : > { %857 = vmatpush.bf16.msra.mxu1 %v1480_v48  ;;  %1503 = vmatpush.bf16.msra.mxu3 %v1480_v48  ;;  %v1467_v48 = vld [vmem:[%s1782_s12 + $0xd4] sm:$0xf0] }
  0x88   : > { %v1351_v54 = vor.u32 %v1467_v48, %v1350_v47  ;;  %v412_v47 = vld [vmem:[#allocation2 + $0x18] sm:$0xff] }
  0x89   : > { %769 = vmatmul.bf16.vlgmr.msra.gmra.mxu0 %v1247_v57  ;;  %809 = vmatmul.bf16.vlgmr.msra.gmra.mxu2 %v1311_v58  ;;  %v1294_v57 = vld [vmem:[%s1782_s12 + $0x60] sm:$0xf]  ;;  %v1453_v58 = vld [vmem:[%s1782_s12 + $0x64] sm:$0xf0] }
  0x8a   : > { %858 = vmatmul.bf16.vlgmr.msra.gmra.mxu1 %v1251_v59  ;;  %898 = vmatmul.bf16.vlgmr.msra.gmra.mxu3 %v1315_v60  ;;  %v1358_v59 = vld [vmem:[%s1782_s12 + $0xe0] sm:$0xf]  ;;  %v1469_v60 = vld [vmem:[%s1782_s12 + $0xe4] sm:$0xf0]  ;;  %v1295_v1 = vor.u32 %v1453_v58, %v1294_v57  ;;  %v413_v57 = vld [vmem:[#allocation2 + $0x50] sm:$0xff] }
  0x8b   : > { %v1359_v2 = vor.u32 %v1469_v60, %v1358_v59 }
  0x99   : > { %774 = vmatmul.bf16.gmra.mxu0 %v1255_v5  ;;  %814 = vmatmul.bf16.gmra.mxu2 %v1319_v6  ;;  %v1302_v5 = vld [vmem:[%s1782_s12 + $0x70] sm:$0xf]  ;;  %v1455_v6 = vld [vmem:[%s1782_s12 + $0x74] sm:$0xf0] }
  0x9a   : > { %863 = vmatmul.bf16.gmra.mxu1 %v1259_v7  ;;  %903 = vmatmul.bf16.gmra.mxu3 %v1323_v8  ;;  %v1366_v7 = vld [vmem:[%s1782_s12 + $0xf0] sm:$0xf]  ;;  %v1471_v8 = vld [vmem:[%s1782_s12 + $0xf4] sm:$0xf0]  ;;  %v1303_v13 = vor.u32 %v1455_v6, %v1302_v5 }
  0x9b   : > { %v1367_v14 = vor.u32 %v1471_v8, %v1366_v7 }
  0xa9   : > { %779 = vmatmul.bf16.gmra.mxu0 %v1263_v17  ;;  %819 = vmatmul.bf16.gmra.mxu2 %v1327_v18  ;;  %v409_v18 = vld [vmem:[#allocation2 + $0xb0] sm:$0xff] }
  0xaa   : > { %868 = vmatmul.bf16.gmra.mxu1 %v1267_v19  ;;  %908 = vmatmul.bf16.gmra.mxu3 %v1331_v20 }
  0xb9   : > { %784 = vmatmul.bf16.gmra.mxu0 %v1271_v29  ;;  %824 = vmatmul.bf16.gmra.mxu2 %v1335_v30 }
  0xba   : > { %873 = vmatmul.bf16.gmra.mxu1 %v1275_v31  ;;  %913 = vmatmul.bf16.gmra.mxu3 %v1339_v32 }
  0xc9   : > { %789 = vmatmul.bf16.gmra.mxu0 %v1279_v41  ;;  %829 = vmatmul.bf16.gmra.mxu2 %v1343_v42 }
  0xca   : > { %878 = vmatmul.bf16.gmra.mxu1 %v1283_v43  ;;  %918 = vmatmul.bf16.gmra.mxu3 %v1347_v44  ;;  %v427_v43 = vld [vmem:[#allocation2 + $0x40] sm:$0xff] }
  0xd9   : > { %794 = vmatmul.bf16.gmra.mxu0 %v1287_v53  ;;  %834 = vmatmul.bf16.gmra.mxu2 %v1351_v54  ;;  %v428_v53 = vld [vmem:[#allocation2 + $0xc8] sm:$0xff] }
  0xda   : > { %883 = vmatmul.bf16.gmra.mxu1 %v1291_v55  ;;  %923 = vmatmul.bf16.gmra.mxu3 %v1355_v56 }
  0xe9   : > { %799 = vmatmul.bf16.gmra.mxu0 %v1295_v1  ;;  %839 = vmatmul.bf16.gmra.mxu2 %v1359_v2 }
  0xea   : > { %888 = vmatmul.bf16.gmra.mxu1 %v1299_v3  ;;  %928 = vmatmul.bf16.gmra.mxu3 %v1363_v4  ;;  %v414_v3 = vld [vmem:[#allocation2 + $0x68] sm:$0xff] }
  0xf9   : > { %804 = vmatmul.bf16.gmra.mxu0 %v1303_v13  ;;  %844 = vmatmul.bf16.gmra.mxu2 %v1367_v14  ;;  %v415_v13 = vld [vmem:[#allocation2 + $0x30] sm:$0xff] }
  0xfa   : > { %893 = vmatmul.bf16.gmra.mxu1 %v1307_v15  ;;  %933 = vmatmul.bf16.gmra.mxu3 %v1371_v16 }
 0x106   : > { %v770_v17 = vpop.f32.mrf.mxu0 }
 0x107   : > { %v859_v19 = vpop.f32.mrf.mxu1 }
 0x108   : > { %v860_v20 = vadd.f32 %v859_v19, %v770_v17  ;;  %v431_v19 = vld [vmem:[#allocation2 + $0x70] sm:$0xff] }
 0x10a   : > { %v939_v21 = vadd.f32 %v860_v20, %v409_v18 }
 0x10c   : > { %971 = vst [vmem:[#allocation2 + $0xb0] sm:$0xff] %v939_v21  ;;  %v810_v22 = vpop.f32.mrf.mxu2 }
 0x10d   : > { %v899_v24 = vpop.f32.mrf.mxu3 }
 0x10e   : > { %v900_v25 = vadd.f32 %v899_v24, %v810_v22  ;;  %v772_v26 = vpop.f32.mrf.mxu0 }
 0x10f   : > { %v861_v28 = vpop.f32.mrf.mxu1 }
 0x110   : > { %v955_v29 = vadd.f32 %v900_v25, %v425_v23  ;;  %v862_v30 = vadd.f32 %v861_v28, %v772_v26  ;;  %v416_v23 = vld [vmem:[#allocation2 + $0x48] sm:$0xff] }
 0x112   : > { %987 = vst [vmem:[#allocation2 + $0x38] sm:$0xff] %v955_v29  ;;  %v940_v31 = vadd.f32 %v862_v30, %v410_v27  ;;  %v432_v29 = vld [vmem:[#allocation2 + $0xc0] sm:$0xff] }
 0x114   : > { %972 = vst [vmem:[#allocation2] sm:$0xff] %v940_v31  ;;  %v812_v32 = vpop.f32.mrf.mxu2 }
 0x115   : > { %v901_v34 = vpop.f32.mrf.mxu3 }
 0x116   : > { %v902_v35 = vadd.f32 %v901_v34, %v812_v32  ;;  %v775_v36 = vpop.f32.mrf.mxu0 }
 0x117   : > { %v864_v38 = vpop.f32.mrf.mxu1 }
 0x118   : > { %v956_v39 = vadd.f32 %v902_v35, %v426_v33  ;;  %v865_v40 = vadd.f32 %v864_v38, %v775_v36  ;;  %v417_v33 = vld [vmem:[#allocation2 + $0x80] sm:$0xff] }
 0x11a   : > { %988 = vst [vmem:[#allocation2 + $0x58] sm:$0xff] %v956_v39  ;;  %v941_v41 = vadd.f32 %v865_v40, %v411_v37  ;;  %v433_v39 = vld [vmem:[#allocation2 + $0xa8] sm:$0xff] }
 0x11c   : > { %973 = vst [vmem:[#allocation2 + $0xd8] sm:$0xff] %v941_v41  ;;  %v815_v42 = vpop.f32.mrf.mxu2 }
 0x11d   : > { %v904_v44 = vpop.f32.mrf.mxu3 }
 0x11e   : > { %v905_v45 = vadd.f32 %v904_v44, %v815_v42  ;;  %v777_v46 = vpop.f32.mrf.mxu0 }
 0x11f   : > { %v866_v48 = vpop.f32.mrf.mxu1 }
 0x120   : > { %v957_v49 = vadd.f32 %v905_v45, %v427_v43  ;;  %v867_v50 = vadd.f32 %v866_v48, %v777_v46  ;;  %v418_v43 = vld [vmem:[#allocation2 + $0x88] sm:$0xff] }
 0x122   : > { %989 = vst [vmem:[#allocation2 + $0x40] sm:$0xff] %v957_v49  ;;  %v942_v51 = vadd.f32 %v867_v50, %v412_v47  ;;  %v434_v49 = vld [vmem:[#allocation2 + $0xd0] sm:$0xff] }
 0x124   : > { %974 = vst [vmem:[#allocation2 + $0x18] sm:$0xff] %v942_v51  ;;  %v817_v52 = vpop.f32.mrf.mxu2 }
 0x125   : > { %v906_v54 = vpop.f32.mrf.mxu3 }
 0x126   : > { %v907_v55 = vadd.f32 %v906_v54, %v817_v52  ;;  %v780_v56 = vpop.f32.mrf.mxu0 }
 0x127   : > { %v869_v58 = vpop.f32.mrf.mxu1 }
 0x128   : > { %v958_v59 = vadd.f32 %v907_v55, %v428_v53  ;;  %v870_v60 = vadd.f32 %v869_v58, %v780_v56  ;;  %v419_v53 = vld [vmem:[#allocation2 + $0xe8] sm:$0xff] }
 0x12a   : > { %990 = vst [vmem:[#allocation2 + $0xc8] sm:$0xff] %v958_v59  ;;  %v943_v61 = vadd.f32 %v870_v60, %v413_v57  ;;  %v435_v59 = vld [vmem:[#allocation2 + $0x10] sm:$0xff] }
 0x12c   : > { %975 = vst [vmem:[#allocation2 + $0x50] sm:$0xff] %v943_v61  ;;  %v820_v62 = vpop.f32.mrf.mxu2 }
 0x12d   : > { %v909_v0 = vpop.f32.mrf.mxu3 }
 0x12e   : > { %v910_v1 = vadd.f32 %v909_v0, %v820_v62  ;;  %v782_v2 = vpop.f32.mrf.mxu0 }
 0x12f   : > { %v871_v4 = vpop.f32.mrf.mxu1 }
 0x130   : > { %v959_v5 = vadd.f32 %v910_v1, %v429_v63  ;;  %v872_v6 = vadd.f32 %v871_v4, %v782_v2  ;;  %v420_v63 = vld [vmem:[#allocation2 + $0xb8] sm:$0xff] }
 0x132   : > { %991 = vst [vmem:[#allocation2 + $0xe0] sm:$0xff] %v959_v5  ;;  %v944_v7 = vadd.f32 %v872_v6, %v414_v3  ;;  %v436_v5 = vld [vmem:[#allocation2 + $0x28] sm:$0xff] }
 0x134   : > { %976 = vst [vmem:[#allocation2 + $0x68] sm:$0xff] %v944_v7  ;;  %v822_v8 = vpop.f32.mrf.mxu2 }
 0x135   : > { %v911_v10 = vpop.f32.mrf.mxu3 }
 0x136   : > { %v912_v11 = vadd.f32 %v911_v10, %v822_v8  ;;  %v785_v12 = vpop.f32.mrf.mxu0 }
 0x137   : > { %v874_v14 = vpop.f32.mrf.mxu1 }
 0x138   : > { %v960_v15 = vadd.f32 %v912_v11, %v430_v9  ;;  %v875_v16 = vadd.f32 %v874_v14, %v785_v12  ;;  %v421_v9 = vld [vmem:[#allocation2 + $0x60] sm:$0xff] }
 0x13a   : > { %992 = vst [vmem:[#allocation2 + $0x90] sm:$0xff] %v960_v15  ;;  %v945_v17 = vadd.f32 %v875_v16, %v415_v13  ;;  %v437_v15 = vld [vmem:[#allocation2 + $0xa0] sm:$0xff] }
 0x13c   : > { %977 = vst [vmem:[#allocation2 + $0x30] sm:$0xff] %v945_v17  ;;  %v825_v18 = vpop.f32.mrf.mxu2 }
 0x13d   : > { %v914_v20 = vpop.f32.mrf.mxu3 }
 0x13e   : > { %v915_v21 = vadd.f32 %v914_v20, %v825_v18  ;;  %v787_v22 = vpop.f32.mrf.mxu0 }
 0x13f   : > { %v876_v24 = vpop.f32.mrf.mxu1 }
 0x140   : > { %v961_v25 = vadd.f32 %v915_v21, %v431_v19  ;;  %v877_v26 = vadd.f32 %v876_v24, %v787_v22  ;;  %v422_v19 = vld [vmem:[#allocation2 + $0xf0] sm:$0xff] }
 0x142   : > { %993 = vst [vmem:[#allocation2 + $0x70] sm:$0xff] %v961_v25  ;;  %v946_v27 = vadd.f32 %v877_v26, %v416_v23  ;;  %v438_v25 = vld [vmem:[#allocation2 + $0xf8] sm:$0xff] }
 0x144   : > { %978 = vst [vmem:[#allocation2 + $0x48] sm:$0xff] %v946_v27  ;;  %v827_v28 = vpop.f32.mrf.mxu2 }
 0x145   : > { %v916_v30 = vpop.f32.mrf.mxu3 }
 0x146   : > { %v917_v31 = vadd.f32 %v916_v30, %v827_v28  ;;  %v790_v32 = vpop.f32.mrf.mxu0 }
 0x147   : > { %v879_v34 = vpop.f32.mrf.mxu1 }
 0x148   : > { %v962_v35 = vadd.f32 %v917_v31, %v432_v29  ;;  %v880_v36 = vadd.f32 %v879_v34, %v790_v32  ;;  %v423_v29 = vld [vmem:[#allocation2 + $0x8] sm:$0xff] }
 0x14a   : > { %994 = vst [vmem:[#allocation2 + $0xc0] sm:$0xff] %v962_v35  ;;  %v947_v37 = vadd.f32 %v880_v36, %v417_v33  ;;  %v439_v35 = vld [vmem:[#allocation2 + $0x20] sm:$0xff] }
 0x14c   : > { %979 = vst [vmem:[#allocation2 + $0x80] sm:$0xff] %v947_v37  ;;  %v830_v38 = vpop.f32.mrf.mxu2 }
 0x14d   : > { %v919_v40 = vpop.f32.mrf.mxu3 }
 0x14e   : > { %v920_v41 = vadd.f32 %v919_v40, %v830_v38  ;;  %v792_v42 = vpop.f32.mrf.mxu0 }
 0x14f   : > { %v881_v44 = vpop.f32.mrf.mxu1 }
 0x150   : > { %v963_v45 = vadd.f32 %v920_v41, %v433_v39  ;;  %v882_v46 = vadd.f32 %v881_v44, %v792_v42  ;;  %v424_v39 = vld [vmem:[#allocation2 + $0x78] sm:$0xff] }
 0x152   : > { %995 = vst [vmem:[#allocation2 + $0xa8] sm:$0xff] %v963_v45  ;;  %v948_v47 = vadd.f32 %v882_v46, %v418_v43  ;;  %v440_v45 = vld [vmem:[#allocation2 + $0x98] sm:$0xff] }
 0x154   : > { %980 = vst [vmem:[#allocation2 + $0x88] sm:$0xff] %v948_v47  ;;  %v832_v48 = vpop.f32.mrf.mxu2 }
 0x155   : > { %v921_v50 = vpop.f32.mrf.mxu3 }
 0x156   : > { %v922_v51 = vadd.f32 %v921_v50, %v832_v48  ;;  %v795_v52 = vpop.f32.mrf.mxu0 }
 0x157   : > { %v884_v54 = vpop.f32.mrf.mxu1 }
 0x158   : > { %v964_v55 = vadd.f32 %v922_v51, %v434_v49  ;;  %v885_v56 = vadd.f32 %v884_v54, %v795_v52 }
 0x15a   : > { %996 = vst [vmem:[#allocation2 + $0xd0] sm:$0xff] %v964_v55  ;;  %v949_v57 = vadd.f32 %v885_v56, %v419_v53 }
 0x15c   : > { %981 = vst [vmem:[#allocation2 + $0xe8] sm:$0xff] %v949_v57  ;;  %v835_v58 = vpop.f32.mrf.mxu2 }
 0x15d   : > { %v924_v60 = vpop.f32.mrf.mxu3 }
 0x15e   : > { %v925_v61 = vadd.f32 %v924_v60, %v835_v58  ;;  %v797_v62 = vpop.f32.mrf.mxu0 }
 0x15f   : > { %v886_v0 = vpop.f32.mrf.mxu1 }
 0x160   : > { %v965_v1 = vadd.f32 %v925_v61, %v435_v59  ;;  %v887_v2 = vadd.f32 %v886_v0, %v797_v62 }
 0x162   : > { %997 = vst [vmem:[#allocation2 + $0x10] sm:$0xff] %v965_v1  ;;  %v950_v3 = vadd.f32 %v887_v2, %v420_v63 }
 0x164   : > { %982 = vst [vmem:[#allocation2 + $0xb8] sm:$0xff] %v950_v3  ;;  %v837_v4 = vpop.f32.mrf.mxu2 }
 0x165   : > { %v926_v6 = vpop.f32.mrf.mxu3 }
 0x166   : > { %v927_v7 = vadd.f32 %v926_v6, %v837_v4  ;;  %v800_v8 = vpop.f32.mrf.mxu0 }
 0x167   : > { %v889_v10 = vpop.f32.mrf.mxu1 }
 0x168   : > { %v966_v11 = vadd.f32 %v927_v7, %v436_v5  ;;  %v890_v12 = vadd.f32 %v889_v10, %v800_v8 }
 0x16a   : > { %998 = vst [vmem:[#allocation2 + $0x28] sm:$0xff] %v966_v11  ;;  %v951_v13 = vadd.f32 %v890_v12, %v421_v9 }
 0x16c   : > { %983 = vst [vmem:[#allocation2 + $0x60] sm:$0xff] %v951_v13  ;;  %v840_v14 = vpop.f32.mrf.mxu2 }
 0x16d   : > { %v929_v16 = vpop.f32.mrf.mxu3 }
 0x16e   : > { %v930_v17 = vadd.f32 %v929_v16, %v840_v14  ;;  %v802_v18 = vpop.f32.mrf.mxu0 }
 0x16f   : > { %v891_v20 = vpop.f32.mrf.mxu1 }
 0x170   : > { %v967_v21 = vadd.f32 %v930_v17, %v437_v15  ;;  %v892_v22 = vadd.f32 %v891_v20, %v802_v18 }
 0x172   : > { %999 = vst [vmem:[#allocation2 + $0xa0] sm:$0xff] %v967_v21  ;;  %v952_v23 = vadd.f32 %v892_v22, %v422_v19 }
 0x174   : > { %984 = vst [vmem:[#allocation2 + $0xf0] sm:$0xff] %v952_v23  ;;  %v842_v24 = vpop.f32.mrf.mxu2 }
 0x175   : > { %v931_v26 = vpop.f32.mrf.mxu3 }
 0x176   : > { %v932_v27 = vadd.f32 %v931_v26, %v842_v24  ;;  %v805_v28 = vpop.f32.mrf.mxu0 }
 0x177   : > { %v894_v30 = vpop.f32.mrf.mxu1 }
 0x178   : > { %v968_v31 = vadd.f32 %v932_v27, %v438_v25  ;;  %v895_v32 = vadd.f32 %v894_v30, %v805_v28 }
 0x17a   : > { %1000 = vst [vmem:[#allocation2 + $0xf8] sm:$0xff] %v968_v31  ;;  %v953_v33 = vadd.f32 %v895_v32, %v423_v29 }
 0x17c   : > { %985 = vst [vmem:[#allocation2 + $0x8] sm:$0xff] %v953_v33  ;;  %v845_v34 = vpop.f32.mrf.mxu2 }
 0x17d   : > { %v934_v36 = vpop.f32.mrf.mxu3 }
 0x17e   : > { %v935_v37 = vadd.f32 %v934_v36, %v845_v34  ;;  %v807_v38 = vpop.f32.mrf.mxu0 }
 0x17f   : > { %v896_v40 = vpop.f32.mrf.mxu1 }
 0x180   : > { %v969_v41 = vadd.f32 %v935_v37, %v439_v35  ;;  %v897_v42 = vadd.f32 %v896_v40, %v807_v38 }
 0x182   : > { %1001 = vst [vmem:[#allocation2 + $0x20] sm:$0xff] %v969_v41  ;;  %v954_v43 = vadd.f32 %v897_v42, %v424_v39 }
 0x184   : > { %986 = vst [vmem:[#allocation2 + $0x78] sm:$0xff] %v954_v43  ;;  %v847_v44 = vpop.f32.mrf.mxu2 }
 0x185   : > { %v936_v46 = vpop.f32.mrf.mxu3 }
 0x186   : > { %v937_v47 = vadd.f32 %v936_v46, %v847_v44  ;;  %1006 = sbr.rel (%p1436_p13) target bundleno = 432 (0x1b0), region = 78 }
 0x188   : > { %v970_v48 = vadd.f32 %v937_v47, %v440_v45 }
 0x18a   : > { %1002 = vst [vmem:[#allocation2 + $0x98] sm:$0xff] %v970_v48 }
 0x18b   : > { %v1007_v49 = vld [vmem:[#allocation2 + $0xb0] sm:$0xff]  ;;  %v1869_v50 = vld [vmem:[%s1958_s2] ss:$0 sm:$0xff]  ;;  %v1009_v52 = vld [vmem:[#allocation2 + $0xd8] sm:$0xff] }
 0x18c   : > { %v1008_v51 = vld [vmem:[#allocation2] sm:$0xff]  ;;  %v1010_v53 = vld [vmem:[#allocation2 + $0x18] sm:$0xff]  ;;  %v1043_v54 = vadd.f32 %v1869_v50, %v1007_v49  ;;  %v1045_v56 = vadd.f32 %v1869_v50, %v1009_v52  ;;  %v1011_v58 = vld [vmem:[#allocation2 + $0x50] sm:$0xff] }
 0x18d   : > { %v1044_v55 = vadd.f32 %v1869_v50, %v1008_v51  ;;  %v1046_v57 = vadd.f32 %v1869_v50, %v1010_v53  ;;  %v1012_v59 = vld [vmem:[#allocation2 + $0x68] sm:$0xff]  ;;  %v1013_v60 = vld [vmem:[#allocation2 + $0x30] sm:$0xff]  ;;  %v1047_v61 = vadd.f32 %v1869_v50, %v1011_v58  ;;  %v1015_v0 = vld [vmem:[#allocation2 + $0x80] sm:$0xff] }
 0x18e   : > { %v1048_v62 = vadd.f32 %v1869_v50, %v1012_v59  ;;  %v1014_v63 = vld [vmem:[#allocation2 + $0x48] sm:$0xff]  ;;  %v1075_v1 = vmax.f32 %v1043_v54, 0.0  ;;  %v1077_v3 = vmax.f32 %v1045_v56, 0.0  ;;  %v1049_v4 = vadd.f32 %v1869_v50, %v1013_v60  ;;  %v1018_v11 = vld [vmem:[#allocation2 + $0xb8] sm:$0xff]  ;;  %v1019_v14 = vld [vmem:[#allocation2 + $0x60] sm:$0xff] }
 0x18f   : > { %v1076_v2 = vmax.f32 %v1044_v55, 0.0  ;;  %v1016_v5 = vld [vmem:[#allocation2 + $0x88] sm:$0xff]  ;;  %v1078_v6 = vmax.f32 %v1046_v57, 0.0  ;;  %v1050_v7 = vadd.f32 %v1869_v50, %v1014_v63  ;;  %v1079_v9 = vmax.f32 %v1047_v61, 0.0  ;;  %v1020_v17 = vld [vmem:[#allocation2 + $0xf0] sm:$0xff]  ;;  %v1022_v23 = vld [vmem:[#allocation2 + $0x78] sm:$0xff] }
 0x190   : > { %v1017_v8 = vld [vmem:[#allocation2 + $0xe8] sm:$0xff]  ;;  %1107 = vst [vmem:[%s1780_s30] sm:$0xff] %v1075_v1  ;;  %v1051_v10 = vadd.f32 %v1869_v50, %v1015_v0  ;;  %v1080_v12 = vmax.f32 %v1048_v62, 0.0  ;;  %v1052_v13 = vadd.f32 %v1869_v50, %v1016_v5  ;;  %v1081_v15 = vmax.f32 %v1049_v4, 0.0  ;;  %v1023_v26 = vld [vmem:[#allocation2 + $0x38] sm:$0xff]  ;;  %v1025_v32 = vld [vmem:[#allocation2 + $0x40] sm:$0xff] }
 0x191   : > { %1108 = vst [vmem:[%s1780_s30 + $0x8] sm:$0xff] %v1076_v2  ;;  %v1053_v16 = vadd.f32 %v1869_v50, %v1017_v8  ;;  %v1082_v18 = vmax.f32 %v1050_v7, 0.0  ;;  %v1054_v19 = vadd.f32 %v1869_v50, %v1018_v11  ;;  %v1021_v20 = vld [vmem:[#allocation2 + $0x8] sm:$0xff]  ;;  %v1055_v22 = vadd.f32 %v1869_v50, %v1019_v14  ;;  %v1024_v29 = vld [vmem:[#allocation2 + $0x58] sm:$0xff]  ;;  %v1027_v38 = vld [vmem:[#allocation2 + $0xe0] sm:$0xff] }
 0x192   : > { %1109 = vst [vmem:[%s1780_s30 + $0x10] sm:$0xff] %v1077_v3  ;;  %v1083_v21 = vmax.f32 %v1051_v10, 0.0  ;;  %v1084_v24 = vmax.f32 %v1052_v13, 0.0  ;;  %v1056_v25 = vadd.f32 %v1869_v50, %v1020_v17  ;;  %v1057_v28 = vadd.f32 %v1869_v50, %v1021_v20  ;;  %v1026_v35 = vld [vmem:[#allocation2 + $0xc8] sm:$0xff]  ;;  %v1028_v41 = vld [vmem:[#allocation2 + $0x90] sm:$0xff]  ;;  %v1030_v47 = vld [vmem:[#allocation2 + $0xc0] sm:$0xff] }
 0x193   : > { %1110 = vst [vmem:[%s1780_s30 + $0x18] sm:$0xff] %v1078_v6  ;;  %v1085_v27 = vmax.f32 %v1053_v16, 0.0  ;;  %v1086_v30 = vmax.f32 %v1054_v19, 0.0  ;;  %v1058_v31 = vadd.f32 %v1869_v50, %v1022_v23  ;;  %v1087_v33 = vmax.f32 %v1055_v22, 0.0  ;;  %v1029_v44 = vld [vmem:[#allocation2 + $0x70] sm:$0xff]  ;;  %v1031_v51 = vld [vmem:[#allocation2 + $0xa8] sm:$0xff] }
 0x194   : > { %1111 = vst [vmem:[%s1780_s30 + $0x20] sm:$0xff] %v1079_v9  ;;  %v1059_v34 = vadd.f32 %v1869_v50, %v1023_v26  ;;  %v1088_v36 = vmax.f32 %v1056_v25, 0.0  ;;  %v1060_v37 = vadd.f32 %v1869_v50, %v1024_v29  ;;  %v1089_v39 = vmax.f32 %v1057_v28, 0.0  ;;  %v1032_v54 = vld [vmem:[#allocation2 + $0xd0] sm:$0xff]  ;;  %v1034_v60 = vld [vmem:[#allocation2 + $0x28] sm:$0xff]  ;;  %v1035_v63 = vld [vmem:[#allocation2 + $0xa0] sm:$0xff] }
 0x195   : > { %1112 = vst [vmem:[%s1780_s30 + $0x28] sm:$0xff] %v1080_v12  ;;  %v1061_v40 = vadd.f32 %v1869_v50, %v1025_v32  ;;  %v1090_v42 = vmax.f32 %v1058_v31, 0.0  ;;  %v1062_v43 = vadd.f32 %v1869_v50, %v1026_v35  ;;  %v1063_v46 = vadd.f32 %v1869_v50, %v1027_v38  ;;  %v1033_v57 = vld [vmem:[#allocation2 + $0x10] sm:$0xff]  ;;  %v1036_v2 = vld [vmem:[#allocation2 + $0xf8] sm:$0xff]  ;;  %v1037_v5 = vld [vmem:[#allocation2 + $0x20] sm:$0xff] }
 0x196   : > { %1113 = vst [vmem:[%s1780_s30 + $0x30] sm:$0xff] %v1081_v15  ;;  %v1091_v45 = vmax.f32 %v1059_v34, 0.0  ;;  %v1092_v48 = vmax.f32 %v1060_v37, 0.0  ;;  %v1064_v49 = vadd.f32 %v1869_v50, %v1028_v41  ;;  %v1065_v53 = vadd.f32 %v1869_v50, %v1029_v44  ;;  %v1038_v8 = vld [vmem:[#allocation2 + $0x98] sm:$0xff] }
 0x197   : > { %1114 = vst [vmem:[%s1780_s30 + $0x38] sm:$0xff] %v1082_v18  ;;  %v1093_v52 = vmax.f32 %v1061_v40, 0.0  ;;  %v1094_v55 = vmax.f32 %v1062_v43, 0.0  ;;  %v1066_v56 = vadd.f32 %v1869_v50, %v1030_v47  ;;  %v1095_v58 = vmax.f32 %v1063_v46, 0.0 }
 0x198   : > { %1115 = vst [vmem:[%s1780_s30 + $0x40] sm:$0xff] %v1083_v21  ;;  %v1067_v59 = vadd.f32 %v1869_v50, %v1031_v51  ;;  %v1096_v61 = vmax.f32 %v1064_v49, 0.0  ;;  %v1068_v62 = vadd.f32 %v1869_v50, %v1032_v54  ;;  %v1097_v0 = vmax.f32 %v1065_v53, 0.0 }
 0x199   : > { %1116 = vst [vmem:[%s1780_s30 + $0x48] sm:$0xff] %v1084_v24  ;;  %v1069_v1 = vadd.f32 %v1869_v50, %v1033_v57  ;;  %v1098_v3 = vmax.f32 %v1066_v56, 0.0  ;;  %v1070_v4 = vadd.f32 %v1869_v50, %v1034_v60  ;;  %v1071_v7 = vadd.f32 %v1869_v50, %v1035_v63 }
 0x19a   : > { %1117 = vst [vmem:[%s1780_s30 + $0x50] sm:$0xff] %v1085_v27  ;;  %v1099_v6 = vmax.f32 %v1067_v59, 0.0  ;;  %v1100_v9 = vmax.f32 %v1068_v62, 0.0  ;;  %v1072_v10 = vadd.f32 %v1869_v50, %v1036_v2  ;;  %v1073_v12 = vadd.f32 %v1869_v50, %v1037_v5 }
 0x19b   : > { %1118 = vst [vmem:[%s1780_s30 + $0x58] sm:$0xff] %v1086_v30  ;;  %v1101_v11 = vmax.f32 %v1069_v1, 0.0  ;;  %v1102_v13 = vmax.f32 %v1070_v4, 0.0  ;;  %v1074_v14 = vadd.f32 %v1869_v50, %v1038_v8  ;;  %v1103_v15 = vmax.f32 %v1071_v7, 0.0 }
 0x19c   : > { %1119 = vst [vmem:[%s1780_s30 + $0x60] sm:$0xff] %v1087_v33  ;;  %v1104_v16 = vmax.f32 %v1072_v10, 0.0  ;;  %v1105_v17 = vmax.f32 %v1073_v12, 0.0 }
 0x19d   : > { %1120 = vst [vmem:[%s1780_s30 + $0x68] sm:$0xff] %v1088_v36  ;;  %v1106_v18 = vmax.f32 %v1074_v14, 0.0 }
 0x19e   : > { %1121 = vst [vmem:[%s1780_s30 + $0x70] sm:$0xff] %v1089_v39 }
 0x19f   : > { %1122 = vst [vmem:[%s1780_s30 + $0x78] sm:$0xff] %v1090_v42 }
 0x1a0   : > { %1123 = vst [vmem:[%s1780_s30 + $0x80] sm:$0xff] %v1091_v45 }
 0x1a1   : > { %1124 = vst [vmem:[%s1780_s30 + $0x88] sm:$0xff] %v1092_v48 }
 0x1a2   : > { %1125 = vst [vmem:[%s1780_s30 + $0x90] sm:$0xff] %v1093_v52 }
 0x1a3   : > { %1126 = vst [vmem:[%s1780_s30 + $0x98] sm:$0xff] %v1094_v55 }
 0x1a4   : > { %1127 = vst [vmem:[%s1780_s30 + $0xa0] sm:$0xff] %v1095_v58 }
 0x1a5   : > { %1128 = vst [vmem:[%s1780_s30 + $0xa8] sm:$0xff] %v1096_v61 }
 0x1a6   : > { %1129 = vst [vmem:[%s1780_s30 + $0xb0] sm:$0xff] %v1097_v0 }
 0x1a7   : > { %1130 = vst [vmem:[%s1780_s30 + $0xb8] sm:$0xff] %v1098_v3 }
 0x1a8   : > { %1131 = vst [vmem:[%s1780_s30 + $0xc0] sm:$0xff] %v1099_v6 }
 0x1a9   : > { %1132 = vst [vmem:[%s1780_s30 + $0xc8] sm:$0xff] %v1100_v9 }
 0x1aa   : > { %1133 = vst [vmem:[%s1780_s30 + $0xd0] sm:$0xff] %v1101_v11 }
 0x1ab   : > { %1134 = vst [vmem:[%s1780_s30 + $0xd8] sm:$0xff] %v1102_v13 }
 0x1ac   : > { %1135 = vst [vmem:[%s1780_s30 + $0xe0] sm:$0xff] %v1103_v15 }
 0x1ad   : > { %1136 = vst [vmem:[%s1780_s30 + $0xe8] sm:$0xff] %v1104_v16 }
 0x1ae   : > { %1137 = vst [vmem:[%s1780_s30 + $0xf0] sm:$0xff] %v1105_v17 }
 0x1af   : > { %1138 = vst [vmem:[%s1780_s30 + $0xf8] sm:$0xff] %v1106_v18 }
 0x1b0 PF: > { %s13_s18 = sadd.s32 1, %s1616_s18   ;;  %s1960_s12 = smov %s1596_s13 }
 0x1b1   : > { %p10_p0 = scmp.ge.s32.totalorder %s13_s18, 6   ;;  %s1961_s13 = smov %s1690_s25 }
 0x1b2   : > { %s1962_s14 = smov %s1608_s16  ;;  %s1963_s15 = smov %s1612_s17 }
 0x1b3   : > { %s1964_s16 = smov %s1967_s19  ;;  %s1965_s17 = smov %s1971_s20 }
 0x1b4   :  { %12 = sbr.rel (!%p10_p0) target bundleno = 4 (0x4), region = 116 }

</bundles_post_ra>
